<compile_context>
chip_gen: v5e
topology: v5e:2x2
jax: 0.10.0
libtpu: 0.0.40
codegen_flags: <defaults>
</compile_context>

<pallas_src>
import math
import functools

import jax
import jax.numpy as jnp
from jax import lax
from jax.experimental import pallas as pl
from jax.experimental.pallas import tpu as pltpu


# ----------------------------- helpers --------------------------------------

def _vmem_budget_bytes():
    """Scoped-VMEM budget: 3/4 of physical, capped at 96 MiB (safe on v7x)."""
    try:
        cap = pltpu.get_tpu_info().vmem_capacity_bytes
    except Exception:
        cap = 64 * 1024 * 1024          # conservative (v7x per-TC) fallback
    return int(min(cap * 3 // 4, 96 * 1024 * 1024))


def _auto_b_tile(B, S, D, d_hid, nhead, budget):
    """Largest divisor of B whose encoder-step VMEM footprint fits the budget."""
    def est(bt):
        R = bt * S
        scratch = R * D * 4                                   # resident f32 act
        act_io = 2 * R * D * 4 + 2 * R * D * 2                # dbl-buf in/out
        weights = 2 * 2 * (3 * D * D + D * D + 2 * D * d_hid) # dbl-buf bf16 slabs
        temps = R * (3 * D + d_hid + 2 * D) * 4               # qkv / h1 / attn f32
        temps += 2 * bt * nhead * S * S * 4                   # scores / probs f32
        consts = S * D * 4 + S * S * 4                        # pe + mask
        return scratch + act_io + weights + temps + consts
    bt = B
    while bt > 1 and est(bt) > budget:
        bt -= 1
        while bt > 1 and B % bt != 0:
            bt -= 1
    return max(bt, 1)


def _layernorm(x, w, b, eps=1e-5):
    # single-pass variance: E[x^2] - mu^2
    mu = jnp.mean(x, axis=-1, keepdims=True)
    var = jnp.mean(x * x, axis=-1, keepdims=True) - mu * mu
    return (x - mu) * lax.rsqrt(var + eps) * w + b


# ----------------------------- kernels -------------------------------------

def _fused_encoder_kernel(x_ref, pe_ref, mask_ref,
                          wqkv_ref, bqkv_ref, wo_ref, bo_ref,
                          ln1w_ref, ln1b_ref, w1_ref, b1_ref,
                          w2_ref, b2_ref, ln2w_ref, ln2b_ref,
                          o_ref, acc_ref, *, nhead, scale):
    """grid = (batch_tiles, nlayers).  The activation lives in acc_ref (VMEM,
    f32) across the whole layer axis; only the final hidden state (bf16) is
    written back to HBM.  Matmul weights arrive pre-transposed ([in, out]) in
    bf16; the 1/sqrt(Dh) attention scale is pre-folded into the Q slice."""
    l = pl.program_id(1)
    n_layers = pl.num_programs(1)

    B_t, S, D = x_ref.shape
    R = B_t * S
    H = nhead
    Dh = D // H

    # layer 0: fused embedding-scale + positional encoding (dropout = identity)
    @pl.when(l == 0)
    def _():
        xi = x_ref[...] * scale + pe_ref[...][None, :, :]
        acc_ref[...] = xi.reshape(R, D)

    x = acc_ref[...]                                    # [R, D] f32
    x_bf = x.astype(jnp.bfloat16)
    mask = mask_ref[...]                                # [S, S] additive, f32

    # ---- self-attention ----------------------------------------------------
    # single full-width in-projection for all B_t*S rows (Q already pre-scaled)
    qkv = jnp.dot(x_bf, wqkv_ref[0],
                  preferred_element_type=jnp.float32) + bqkv_ref[0]   # [R, 3D]

    def split_heads(a):                                 # [R, D] -> [B_t*H, S, Dh]
        a = a.reshape(B_t, S, H, Dh)
        a = jnp.swapaxes(a, 1, 2)
        return a.reshape(B_t * H, S, Dh).astype(jnp.bfloat16)

    q3 = split_heads(qkv[:, :D])
    k3 = split_heads(qkv[:, D:2 * D])
    v3 = split_heads(qkv[:, 2 * D:])

    # head-batched QK^T and PV (single dot_general each; no per-head slabs)
    s = jnp.einsum('hqd,hkd->hqk', q3, k3,
                   preferred_element_type=jnp.float32)                # [BH,S,S]
    s = s + mask[None, :, :]
    s = s - jnp.max(s, axis=-1, keepdims=True)
    p = jnp.exp(s)
    p = p * pl.reciprocal(jnp.sum(p, axis=-1, keepdims=True), approx=True)
    ctx = jnp.einsum('hqk,hkd->hqd', p.astype(jnp.bfloat16), v3,
                     preferred_element_type=jnp.float32)              # [BH,S,Dh]
    ctx = jnp.swapaxes(ctx.reshape(B_t, H, S, Dh), 1, 2).reshape(R, D)

    # ONE full-width output projection
    attn = jnp.dot(ctx.astype(jnp.bfloat16), wo_ref[0],
                   preferred_element_type=jnp.float32) + bo_ref[0]

    # residual + LayerNorm 1 (post-norm, f32 statistics); dropout = identity
    x = _layernorm(x + attn, ln1w_ref[0], ln1b_ref[0])

    # ---- feed-forward: linear2(relu(linear1(x))) ----------------------------
    h1 = jnp.dot(x.astype(jnp.bfloat16), w1_ref[0],
                 preferred_element_type=jnp.float32) + b1_ref[0]
    h1 = jnp.maximum(h1, 0.0)
    h2 = jnp.dot(h1.astype(jnp.bfloat16), w2_ref[0],
                 preferred_element_type=jnp.float32) + b2_ref[0]

    # residual + LayerNorm 2
    x = _layernorm(x + h2, ln2w_ref[0], ln2b_ref[0])

    acc_ref[...] = x

    @pl.when(l == n_layers - 1)
    def _():
        o_ref[...] = x.reshape(B_t, S, D).astype(o_ref.dtype)


def _decoder_kernel(x_ref, w_ref, b_ref, o_ref):
    # x_ref: (B_t, S, D) bf16; w_ref: (D, TILE_V) bf16; b_ref: (1, TILE_V) f32
    B_t, S, D = x_ref.shape
    x = x_ref[...].reshape(B_t * S, D)
    logits = jnp.dot(x, w_ref[...],
                     preferred_element_type=jnp.float32) + b_ref[...]
    o_ref[...] = logits.reshape(B_t, S, logits.shape[-1])


# ----------------------------- wrappers ------------------------------------

def _encode(x, pe, mask, p, *, nhead, scale, b_tile, vmem_limit):
    B, S, D = x.shape
    L = p["wqkv_t"].shape[0]
    assert B % b_tile == 0

    def wspec(shape):
        # stacked per-layer parameter [L, a, b] -> fetch layer l's slab
        return pl.BlockSpec((1,) + tuple(shape[1:]), lambda b, l: (l, 0, 0))

    in_specs = [
        pl.BlockSpec((b_tile, S, D), lambda b, l: (b, 0, 0)),   # embedded tokens
        pl.BlockSpec((S, D), lambda b, l: (0, 0)),              # positional enc
        pl.BlockSpec((S, S), lambda b, l: (0, 0)),              # additive mask
        wspec(p["wqkv_t"].shape), wspec(p["bqkv"].shape),
        wspec(p["wo_t"].shape), wspec(p["bo"].shape),
        wspec(p["ln1w"].shape), wspec(p["ln1b"].shape),
        wspec(p["w1_t"].shape), wspec(p["b1"].shape),
        wspec(p["w2_t"].shape), wspec(p["b2"].shape),
        wspec(p["ln2w"].shape), wspec(p["ln2b"].shape),
    ]
    return pl.pallas_call(
        functools.partial(_fused_encoder_kernel, nhead=nhead, scale=scale),
        out_shape=jax.ShapeDtypeStruct((B, S, D), jnp.bfloat16),
        grid=(B // b_tile, L),
        in_specs=in_specs,
        out_specs=pl.BlockSpec((b_tile, S, D), lambda b, l: (b, 0, 0)),
        scratch_shapes=[pltpu.VMEM((b_tile * S, D), jnp.float32)],
        compiler_params=pltpu.CompilerParams(
            dimension_semantics=("parallel", "arbitrary"),
            vmem_limit_bytes=vmem_limit),
    )(x, pe, mask, p["wqkv_t"], p["bqkv"], p["wo_t"], p["bo"],
      p["ln1w"], p["ln1b"], p["w1_t"], p["b1"], p["w2_t"], p["b2"],
      p["ln2w"], p["ln2b"])


def _decode(x, w_t, b, *, b_tile, tile_v, vmem_limit):
    B, S, D = x.shape
    Vp = w_t.shape[1]
    assert B % b_tile == 0 and Vp % tile_v == 0
    return pl.pallas_call(
        _decoder_kernel,
        out_shape=jax.ShapeDtypeStruct((B, S, Vp), jnp.float32),
        grid=(B // b_tile, Vp // tile_v),
        in_specs=[pl.BlockSpec((b_tile, S, D), lambda b, v: (b, 0, 0)),
                  pl.BlockSpec((D, tile_v), lambda b, v: (0, v)),
                  pl.BlockSpec((1, tile_v), lambda b, v: (0, v))],
        out_specs=pl.BlockSpec((b_tile, S, tile_v), lambda b, v: (b, 0, v)),
        compiler_params=pltpu.CompilerParams(
            dimension_semantics=("parallel", "parallel"),
            vmem_limit_bytes=vmem_limit),
    )(x, w_t, b)


def transformer_forward(prepped, src, src_mask, *, nhead, b_tile=None):
    """src: [S, B] int32 tokens; src_mask: [S, S] additive float mask.
    Returns logits of shape [S, B, ntoken] (PyTorch convention)."""
    S, B = src.shape
    D = prepped["emb"].shape[1]
    d_hid = prepped["w1_t"].shape[2]
    V = prepped["ntoken"]
    Vp = prepped["dec_w_t"].shape[1]

    vmem_limit = _vmem_budget_bytes()
    if b_tile is None:
        b_tile = _auto_b_tile(B, S, D, d_hid, nhead, vmem_limit)

    # token-embedding gather is data-dependent; kept as plain-JAX glue
    emb = prepped["emb"][src]                     # [S, B, D]
    x = jnp.transpose(emb, (1, 0, 2))             # -> [B, S, D]
    pe = prepped["pe"][:S]                        # [S, D]
    # TODO(synk): dropout layers are identity here (inference / eval mode)
    hidden = _encode(x, pe, src_mask, prepped, nhead=nhead,
                     scale=math.sqrt(D), b_tile=b_tile,
                     vmem_limit=vmem_limit)       # [B, S, D] bf16
    tile_v = min(512, Vp)                         # Vp padded to a multiple of 512
    logits = _decode(hidden, prepped["dec_w_t"], prepped["dec_b"],
                     b_tile=b_tile, tile_v=tile_v,
                     vmem_limit=vmem_limit)       # [B, S, Vp] f32
    return jnp.transpose(logits[:, :, :V], (1, 0, 2))         # [S, B, ntoken]


# --------------------------- parameter init ---------------------------------

def init_params(key, ntoken, d_model, nhead, d_hid, nlayers, max_len=64):
    """Parameters in torch layout (weights [out, in], biases [out])."""
    keys = jax.random.split(key, 3 + nlayers)
    initrange = 0.1
    emb = jax.random.uniform(keys[0], (ntoken, d_model), jnp.float32,
                             -initrange, initrange)
    dec_w = jax.random.uniform(keys[1], (ntoken, d_model), jnp.float32,
                               -initrange, initrange)
    dec_b = jnp.zeros((ntoken,), jnp.float32)

    # sinusoidal positional encoding (PositionalEncoding buffer)
    position = jnp.arange(max_len, dtype=jnp.float32)[:, None]
    div_term = jnp.exp(jnp.arange(0, d_model, 2, dtype=jnp.float32)
                       * (-math.log(10000.0) / d_model))
    pe = jnp.zeros((max_len, d_model), jnp.float32)
    pe = pe.at[:, 0::2].set(jnp.sin(position * div_term))
    pe = pe.at[:, 1::2].set(jnp.cos(position * div_term))

    def uni(k, shape, fan_in):
        bound = 1.0 / math.sqrt(fan_in)
        return jax.random.uniform(k, shape, jnp.float32, -bound, bound)

    layers = []
    for i in range(nlayers):
        lk = jax.random.split(keys[3 + i], 6)
        layers.append(dict(
            wqkv=uni(lk[0], (3 * d_model, d_model), d_model),
            bqkv=jnp.zeros((3 * d_model,), jnp.float32),
            wo=uni(lk[1], (d_model, d_model), d_model),
            bo=jnp.zeros((d_model,), jnp.float32),
            ln1w=jnp.ones((d_model,), jnp.float32),
            ln1b=jnp.zeros((d_model,), jnp.float32),
            w1=uni(lk[2], (d_hid, d_model), d_model),
            b1=uni(lk[3], (d_hid,), d_model),
            w2=uni(lk[4], (d_model, d_hid), d_hid),
            b2=uni(lk[5], (d_model,), d_hid),
            ln2w=jnp.ones((d_model,), jnp.float32),
            ln2b=jnp.zeros((d_model,), jnp.float32),
        ))
    return dict(emb=emb, pe=pe, dec_w=dec_w, dec_b=dec_b, layers=layers)


def prep_params(params, *, nhead):
    """One-time host-side transform: stack per-layer weights, pre-transpose to
    [in, out] (bf16 for MXU operands), fold 1/sqrt(Dh) into the Q projection,
    and pad the decoder vocab to a multiple of 512 for wide, lane-dense
    logits tiles."""
    D = params["emb"].shape[1]
    assert D % nhead == 0
    Dh = D // nhead
    inv_sqrt_dh = 1.0 / math.sqrt(Dh)

    def stack(name):
        return jnp.stack([lp[name] for lp in params["layers"]], axis=0)

    # fold the attention scale into the query slice of the in-projection
    q_scale = jnp.concatenate([jnp.full((D,), inv_sqrt_dh, jnp.float32),
                               jnp.ones((2 * D,), jnp.float32)])
    wqkv = stack("wqkv") * q_scale[None, :, None]        # [L, 3D, D]
    bqkv = stack("bqkv") * q_scale[None, :]              # [L, 3D]

    def t_bf16(w):                                        # [L, out, in] -> [L, in, out]
        return jnp.transpose(w, (0, 2, 1)).astype(jnp.bfloat16)

    def row(b):                                           # [L, X] -> [L, 1, X]
        return b[:, None, :]

    prepped = dict(
        emb=params["emb"], pe=params["pe"],
        wqkv_t=t_bf16(wqkv), bqkv=row(bqkv),
        wo_t=t_bf16(stack("wo")), bo=row(stack("bo")),
        ln1w=row(stack("ln1w")), ln1b=row(stack("ln1b")),
        w1_t=t_bf16(stack("w1")), b1=row(stack("b1")),
        w2_t=t_bf16(stack("w2")), b2=row(stack("b2")),
        ln2w=row(stack("ln2w")), ln2b=row(stack("ln2b")),
    )

    V = params["dec_w"].shape[0]
    Vp = ((V + 511) // 512) * 512
    dec_w_t = jnp.zeros((D, Vp), jnp.float32).at[:, :V].set(params["dec_w"].T)
    dec_b = jnp.zeros((1, Vp), jnp.float32).at[0, :V].set(params["dec_b"])
    prepped["dec_w_t"] = dec_w_t.astype(jnp.bfloat16)
    prepped["dec_b"] = dec_b
    prepped["ntoken"] = V
    return prepped


# ------------------------------- main ---------------------------------------

if __name__ == "__main__":
    S, B = 8, 2
    ntoken, d_model, nhead, d_hid, nlayers = 50, 32, 4, 64, 2

    key = jax.random.PRNGKey(0)
    pkey, skey = jax.random.split(key)
    params = init_params(pkey, ntoken, d_model, nhead, d_hid, nlayers)
    prepped = prep_params(params, nhead=nhead)

    src = jax.random.randint(skey, (S, B), 0, ntoken, dtype=jnp.int32)
    # causal additive mask (same as generate_square_subsequent_mask)
    src_mask = jnp.where(jnp.tril(jnp.ones((S, S), dtype=bool)),
                         0.0, -jnp.inf).astype(jnp.float32)

    out = transformer_forward(prepped, src, src_mask, nhead=nhead)
    out = jax.block_until_ready(out)
    assert out.shape == (S, B, ntoken), out.shape
    assert bool(jnp.all(jnp.isfinite(out)))
    print("KERNEL_OK")
</pallas_src>

<mosaic_0001>
module attributes {stable_mosaic.version = 11 : i64} {
  func.func @_fused_encoder_kernel(%arg0: i32, %arg1: i32, %arg2: memref<2x8x32xf32, #tpu.memory_space<vmem>>, %arg3: memref<8x32xf32, #tpu.memory_space<vmem>>, %arg4: memref<8x8xf32, #tpu.memory_space<vmem>>, %arg5: memref<1x32x96xbf16, #tpu.memory_space<vmem>>, %arg6: memref<1x1x96xf32, #tpu.memory_space<vmem>>, %arg7: memref<1x32x32xbf16, #tpu.memory_space<vmem>>, %arg8: memref<1x1x32xf32, #tpu.memory_space<vmem>>, %arg9: memref<1x1x32xf32, #tpu.memory_space<vmem>>, %arg10: memref<1x1x32xf32, #tpu.memory_space<vmem>>, %arg11: memref<1x32x64xbf16, #tpu.memory_space<vmem>>, %arg12: memref<1x1x64xf32, #tpu.memory_space<vmem>>, %arg13: memref<1x64x32xbf16, #tpu.memory_space<vmem>>, %arg14: memref<1x1x32xf32, #tpu.memory_space<vmem>>, %arg15: memref<1x1x32xf32, #tpu.memory_space<vmem>>, %arg16: memref<1x1x32xf32, #tpu.memory_space<vmem>>, %arg17: memref<2x8x32xbf16, #tpu.memory_space<vmem>>, %arg18: memref<16x32xf32, #tpu.memory_space<vmem>>) attributes {dimension_semantics = [#tpu.dimension_semantics<parallel>, #tpu.dimension_semantics<arbitrary>], iteration_bounds = array<i64: 1, 2>, scalar_prefetch = 0 : i64, scratch_operands = 1 : i64, tpu.core_type = #tpu.core_type<tc>, window_params = [{transform_indices = @transform_0, window_bounds = array<i64: 2, 8, 32>}, {pipeline_mode = #tpu.pipeline_mode<synchronous>, transform_indices = @transform_1, window_bounds = array<i64: 8, 32>}, {pipeline_mode = #tpu.pipeline_mode<synchronous>, transform_indices = @transform_2, window_bounds = array<i64: 8, 8>}, {transform_indices = @transform_3, window_bounds = array<i64: 1, 32, 96>}, {transform_indices = @transform_4, window_bounds = array<i64: 1, 1, 96>}, {transform_indices = @transform_5, window_bounds = array<i64: 1, 32, 32>}, {transform_indices = @transform_6, window_bounds = array<i64: 1, 1, 32>}, {transform_indices = @transform_7, window_bounds = array<i64: 1, 1, 32>}, {transform_indices = @transform_8, window_bounds = array<i64: 1, 1, 32>}, {transform_indices = @transform_9, window_bounds = array<i64: 1, 32, 64>}, {transform_indices = @transform_10, window_bounds = array<i64: 1, 1, 64>}, {transform_indices = @transform_11, window_bounds = array<i64: 1, 64, 32>}, {transform_indices = @transform_12, window_bounds = array<i64: 1, 1, 32>}, {transform_indices = @transform_13, window_bounds = array<i64: 1, 1, 32>}, {transform_indices = @transform_14, window_bounds = array<i64: 1, 1, 32>}, {transform_indices = @transform_15, window_bounds = array<i64: 2, 8, 32>}]} {
    %c0_i32 = arith.constant 0 : i32
    %0 = arith.cmpi eq, %arg1, %c0_i32 : i32
    %1 = arith.extui %0 : i1 to i32
    %c0_i32_0 = arith.constant 0 : i32
    %2 = arith.cmpi ne, %1, %c0_i32_0 : i32
    scf.if %2 {
      %c0_61 = arith.constant 0 : index
      %c0_62 = arith.constant 0 : index
      %c0_63 = arith.constant 0 : index
      %131 = vector.load %arg2[%c0_61, %c0_62, %c0_63] : memref<2x8x32xf32, #tpu.memory_space<vmem>>, vector<2x8x32xf32>
      %cst_64 = arith.constant 5.65685415 : f32
      %132 = vector.broadcast %cst_64 : f32 to vector<2x8x32xf32>
      %133 = arith.mulf %131, %132 : vector<2x8x32xf32>
      %c0_65 = arith.constant 0 : index
      %c0_66 = arith.constant 0 : index
      %134 = vector.load %arg3[%c0_65, %c0_66] : memref<8x32xf32, #tpu.memory_space<vmem>>, vector<8x32xf32>
      %135 = vector.shape_cast %134 : vector<8x32xf32> to vector<1x8x32xf32>
      %136 = vector.broadcast %135 : vector<1x8x32xf32> to vector<2x8x32xf32>
      %137 = arith.addf %133, %136 : vector<2x8x32xf32>
      %138 = vector.shape_cast %137 : vector<2x8x32xf32> to vector<16x32xf32>
      %c0_67 = arith.constant 0 : index
      %c0_68 = arith.constant 0 : index
      %139 = vector.load %arg18[%c0_67, %c0_68] : memref<16x32xf32, #tpu.memory_space<vmem>>, vector<16x32xf32>
      tpu.vector_store %arg18[%c0_67, %c0_68], %138 {strides = array<i32>} : memref<16x32xf32, #tpu.memory_space<vmem>>, vector<16x32xf32>,
    } else {
    }
    %c0 = arith.constant 0 : index
    %c0_1 = arith.constant 0 : index
    %3 = vector.load %arg18[%c0, %c0_1] : memref<16x32xf32, #tpu.memory_space<vmem>>, vector<16x32xf32>
    %4 = arith.truncf %3 : vector<16x32xf32> to vector<16x32xbf16>
    %c0_2 = arith.constant 0 : index
    %c0_3 = arith.constant 0 : index
    %5 = vector.load %arg4[%c0_2, %c0_3] : memref<8x8xf32, #tpu.memory_space<vmem>>, vector<8x8xf32>
    %c0_4 = arith.constant 0 : index
    %c0_5 = arith.constant 0 : index
    %c0_6 = arith.constant 0 : index
    %6 = vector.load %arg5[%c0_4, %c0_5, %c0_6] : memref<1x32x96xbf16, #tpu.memory_space<vmem>>, vector<1x32x96xbf16>
    %7 = vector.shape_cast %6 : vector<1x32x96xbf16> to vector<32x96xbf16>
    %cst = arith.constant dense<0.000000e+00> : vector<16x96xf32>
    %8 = tpu.matmul %4, %7, %cst {dimension_numbers = #tpu.dot_dimension_numbers<[1], [0], [0], [1], [0, 0, 1, 1], [], []>} : vector<16x32xbf16>, vector<32x96xbf16>, vector<16x96xf32> -> vector<16x96xf32>
    %c0_7 = arith.constant 0 : index
    %c0_8 = arith.constant 0 : index
    %c0_9 = arith.constant 0 : index
    %9 = vector.load %arg6[%c0_7, %c0_8, %c0_9] : memref<1x1x96xf32, #tpu.memory_space<vmem>>, vector<1x1x96xf32>
    %10 = vector.shape_cast %9 : vector<1x1x96xf32> to vector<1x96xf32>
    %11 = vector.broadcast %10 : vector<1x96xf32> to vector<16x96xf32>
    %12 = arith.addf %8, %11 : vector<16x96xf32>
    %13 = vector.extract_strided_slice %12 {offsets = [0, 0], sizes = [16, 32], strides = [1, 1]} : vector<16x96xf32> to vector<16x32xf32>
    %14 = vector.shape_cast %13 : vector<16x32xf32> to vector<2x8x4x8xf32>
    %15 = tpu.transpose %14, [0, 2, 1, 3] : vector<2x8x4x8xf32> -> vector<2x4x8x8xf32>
    %16 = vector.shape_cast %15 : vector<2x4x8x8xf32> to vector<8x8x8xf32>
    %17 = arith.truncf %16 : vector<8x8x8xf32> to vector<8x8x8xbf16>
    %18 = vector.extract_strided_slice %12 {offsets = [0, 32], sizes = [16, 32], strides = [1, 1]} : vector<16x96xf32> to vector<16x32xf32>
    %19 = vector.shape_cast %18 : vector<16x32xf32> to vector<2x8x4x8xf32>
    %20 = tpu.transpose %19, [0, 2, 1, 3] : vector<2x8x4x8xf32> -> vector<2x4x8x8xf32>
    %21 = vector.shape_cast %20 : vector<2x4x8x8xf32> to vector<8x8x8xf32>
    %22 = arith.truncf %21 : vector<8x8x8xf32> to vector<8x8x8xbf16>
    %23 = vector.extract_strided_slice %12 {offsets = [0, 64], sizes = [16, 32], strides = [1, 1]} : vector<16x96xf32> to vector<16x32xf32>
    %24 = vector.shape_cast %23 : vector<16x32xf32> to vector<2x8x4x8xf32>
    %25 = tpu.transpose %24, [0, 2, 1, 3] : vector<2x8x4x8xf32> -> vector<2x4x8x8xf32>
    %26 = vector.shape_cast %25 : vector<2x4x8x8xf32> to vector<8x8x8xf32>
    %27 = arith.truncf %26 : vector<8x8x8xf32> to vector<8x8x8xbf16>
    "tpu.trace_start"() <{level = 10 : i32, message = "hqd,hkd->hqk"}> : () -> ()
    %cst_10 = arith.constant dense<0.000000e+00> : vector<8x8x8xf32>
    %28 = tpu.matmul %17, %22, %cst_10 {dimension_numbers = #tpu.dot_dimension_numbers<[2], [2], [1], [1], [0, 0, 0, 1, 1, 1], [0], [0]>} : vector<8x8x8xbf16>, vector<8x8x8xbf16>, vector<8x8x8xf32> -> vector<8x8x8xf32>
    "tpu.trace_stop"() : () -> ()
    %29 = vector.shape_cast %5 : vector<8x8xf32> to vector<1x8x8xf32>
    %30 = vector.broadcast %29 : vector<1x8x8xf32> to vector<8x8x8xf32>
    %31 = arith.addf %28, %30 : vector<8x8x8xf32>
    %cst_11 = arith.constant dense<0xFF800000> : vector<8x8xf32>
    %32 = vector.multi_reduction <maximumf>, %31, %cst_11 [2] : vector<8x8x8xf32> to vector<8x8xf32>
    %33 = vector.shape_cast %32 : vector<8x8xf32> to vector<8x8x1xf32>
    %34 = vector.broadcast %33 : vector<8x8x1xf32> to vector<8x8x8xf32>
    %35 = arith.subf %31, %34 : vector<8x8x8xf32>
    %36 = math.exp %35 : vector<8x8x8xf32>
    %cst_12 = arith.constant dense<0.000000e+00> : vector<8x8xf32>
    %37 = vector.multi_reduction <add>, %36, %cst_12 [2] : vector<8x8x8xf32> to vector<8x8xf32>
    %38 = vector.shape_cast %37 : vector<8x8xf32> to vector<8x8x1xf32>
    %39 = tpu.reciprocal %38 {approx = true} : vector<8x8x1xf32> -> vector<8x8x1xf32>
    %40 = vector.broadcast %39 : vector<8x8x1xf32> to vector<8x8x8xf32>
    %41 = arith.mulf %36, %40 : vector<8x8x8xf32>
    %42 = arith.truncf %41 : vector<8x8x8xf32> to vector<8x8x8xbf16>
    "tpu.trace_start"() <{level = 10 : i32, message = "hqk,hkd->hqd"}> : () -> ()
    %cst_13 = arith.constant dense<0.000000e+00> : vector<8x8x8xf32>
    %43 = tpu.matmul %42, %27, %cst_13 {dimension_numbers = #tpu.dot_dimension_numbers<[2], [1], [1], [2], [0, 0, 0, 1, 1, 2], [0], [0]>} : vector<8x8x8xbf16>, vector<8x8x8xbf16>, vector<8x8x8xf32> -> vector<8x8x8xf32>
    "tpu.trace_stop"() : () -> ()
    %44 = vector.shape_cast %43 : vector<8x8x8xf32> to vector<2x4x8x8xf32>
    %45 = tpu.transpose %44, [0, 2, 1, 3] : vector<2x4x8x8xf32> -> vector<2x8x4x8xf32>
    %46 = vector.shape_cast %45 : vector<2x8x4x8xf32> to vector<16x32xf32>
    %47 = arith.truncf %46 : vector<16x32xf32> to vector<16x32xbf16>
    %c0_14 = arith.constant 0 : index
    %c0_15 = arith.constant 0 : index
    %c0_16 = arith.constant 0 : index
    %48 = vector.load %arg7[%c0_14, %c0_15, %c0_16] : memref<1x32x32xbf16, #tpu.memory_space<vmem>>, vector<1x32x32xbf16>
    %49 = vector.shape_cast %48 : vector<1x32x32xbf16> to vector<32x32xbf16>
    %cst_17 = arith.constant dense<0.000000e+00> : vector<16x32xf32>
    %50 = tpu.matmul %47, %49, %cst_17 {dimension_numbers = #tpu.dot_dimension_numbers<[1], [0], [0], [1], [0, 0, 1, 1], [], []>} : vector<16x32xbf16>, vector<32x32xbf16>, vector<16x32xf32> -> vector<16x32xf32>
    %c0_18 = arith.constant 0 : index
    %c0_19 = arith.constant 0 : index
    %c0_20 = arith.constant 0 : index
    %51 = vector.load %arg8[%c0_18, %c0_19, %c0_20] : memref<1x1x32xf32, #tpu.memory_space<vmem>>, vector<1x1x32xf32>
    %52 = vector.shape_cast %51 : vector<1x1x32xf32> to vector<1x32xf32>
    %53 = vector.broadcast %52 : vector<1x32xf32> to vector<16x32xf32>
    %54 = arith.addf %50, %53 : vector<16x32xf32>
    %55 = arith.addf %3, %54 : vector<16x32xf32>
    %c0_21 = arith.constant 0 : index
    %c0_22 = arith.constant 0 : index
    %c0_23 = arith.constant 0 : index
    %56 = vector.load %arg9[%c0_21, %c0_22, %c0_23] : memref<1x1x32xf32, #tpu.memory_space<vmem>>, vector<1x1x32xf32>
    %57 = vector.shape_cast %56 : vector<1x1x32xf32> to vector<1x32xf32>
    %c0_24 = arith.constant 0 : index
    %c0_25 = arith.constant 0 : index
    %c0_26 = arith.constant 0 : index
    %58 = vector.load %arg10[%c0_24, %c0_25, %c0_26] : memref<1x1x32xf32, #tpu.memory_space<vmem>>, vector<1x1x32xf32>
    %59 = vector.shape_cast %58 : vector<1x1x32xf32> to vector<1x32xf32>
    %cst_27 = arith.constant dense<0.000000e+00> : vector<16xf32>
    %60 = vector.multi_reduction <add>, %55, %cst_27 [1] : vector<16x32xf32> to vector<16xf32>
    %61 = vector.shape_cast %60 : vector<16xf32> to vector<16x1xf32>
    %cst_28 = arith.constant 3.200000e+01 : f32
    %62 = vector.broadcast %cst_28 : f32 to vector<16x1xf32>
    %63 = arith.divf %61, %62 : vector<16x1xf32>
    %64 = arith.mulf %55, %55 : vector<16x32xf32>
    %cst_29 = arith.constant dense<0.000000e+00> : vector<16xf32>
    %65 = vector.multi_reduction <add>, %64, %cst_29 [1] : vector<16x32xf32> to vector<16xf32>
    %66 = vector.shape_cast %65 : vector<16xf32> to vector<16x1xf32>
    %cst_30 = arith.constant 3.200000e+01 : f32
    %67 = vector.broadcast %cst_30 : f32 to vector<16x1xf32>
    %68 = arith.divf %66, %67 : vector<16x1xf32>
    %69 = arith.mulf %63, %63 : vector<16x1xf32>
    %70 = arith.subf %68, %69 : vector<16x1xf32>
    %71 = vector.broadcast %63 : vector<16x1xf32> to vector<16x32xf32>
    %72 = arith.subf %55, %71 : vector<16x32xf32>
    %cst_31 = arith.constant 9.99999974E-6 : f32
    %73 = vector.broadcast %cst_31 : f32 to vector<16x1xf32>
    %74 = arith.addf %70, %73 : vector<16x1xf32>
    %75 = math.rsqrt %74 : vector<16x1xf32>
    %76 = vector.broadcast %75 : vector<16x1xf32> to vector<16x32xf32>
    %77 = arith.mulf %72, %76 : vector<16x32xf32>
    %78 = vector.broadcast %57 : vector<1x32xf32> to vector<16x32xf32>
    %79 = arith.mulf %77, %78 : vector<16x32xf32>
    %80 = vector.broadcast %59 : vector<1x32xf32> to vector<16x32xf32>
    %81 = arith.addf %79, %80 : vector<16x32xf32>
    %82 = arith.truncf %81 : vector<16x32xf32> to vector<16x32xbf16>
    %c0_32 = arith.constant 0 : index
    %c0_33 = arith.constant 0 : index
    %c0_34 = arith.constant 0 : index
    %83 = vector.load %arg11[%c0_32, %c0_33, %c0_34] : memref<1x32x64xbf16, #tpu.memory_space<vmem>>, vector<1x32x64xbf16>
    %84 = vector.shape_cast %83 : vector<1x32x64xbf16> to vector<32x64xbf16>
    %cst_35 = arith.constant dense<0.000000e+00> : vector<16x64xf32>
    %85 = tpu.matmul %82, %84, %cst_35 {dimension_numbers = #tpu.dot_dimension_numbers<[1], [0], [0], [1], [0, 0, 1, 1], [], []>} : vector<16x32xbf16>, vector<32x64xbf16>, vector<16x64xf32> -> vector<16x64xf32>
    %c0_36 = arith.constant 0 : index
    %c0_37 = arith.constant 0 : index
    %c0_38 = arith.constant 0 : index
    %86 = vector.load %arg12[%c0_36, %c0_37, %c0_38] : memref<1x1x64xf32, #tpu.memory_space<vmem>>, vector<1x1x64xf32>
    %87 = vector.shape_cast %86 : vector<1x1x64xf32> to vector<1x64xf32>
    %88 = vector.broadcast %87 : vector<1x64xf32> to vector<16x64xf32>
    %89 = arith.addf %85, %88 : vector<16x64xf32>
    %cst_39 = arith.constant 0.000000e+00 : f32
    %90 = vector.broadcast %cst_39 : f32 to vector<16x64xf32>
    %91 = arith.maximumf %89, %90 : vector<16x64xf32>
    %92 = arith.truncf %91 : vector<16x64xf32> to vector<16x64xbf16>
    %c0_40 = arith.constant 0 : index
    %c0_41 = arith.constant 0 : index
    %c0_42 = arith.constant 0 : index
    %93 = vector.load %arg13[%c0_40, %c0_41, %c0_42] : memref<1x64x32xbf16, #tpu.memory_space<vmem>>, vector<1x64x32xbf16>
    %94 = vector.shape_cast %93 : vector<1x64x32xbf16> to vector<64x32xbf16>
    %cst_43 = arith.constant dense<0.000000e+00> : vector<16x32xf32>
    %95 = tpu.matmul %92, %94, %cst_43 {dimension_numbers = #tpu.dot_dimension_numbers<[1], [0], [0], [1], [0, 0, 1, 1], [], []>} : vector<16x64xbf16>, vector<64x32xbf16>, vector<16x32xf32> -> vector<16x32xf32>
    %c0_44 = arith.constant 0 : index
    %c0_45 = arith.constant 0 : index
    %c0_46 = arith.constant 0 : index
    %96 = vector.load %arg14[%c0_44, %c0_45, %c0_46] : memref<1x1x32xf32, #tpu.memory_space<vmem>>, vector<1x1x32xf32>
    %97 = vector.shape_cast %96 : vector<1x1x32xf32> to vector<1x32xf32>
    %98 = vector.broadcast %97 : vector<1x32xf32> to vector<16x32xf32>
    %99 = arith.addf %95, %98 : vector<16x32xf32>
    %100 = arith.addf %81, %99 : vector<16x32xf32>
    %c0_47 = arith.constant 0 : index
    %c0_48 = arith.constant 0 : index
    %c0_49 = arith.constant 0 : index
    %101 = vector.load %arg15[%c0_47, %c0_48, %c0_49] : memref<1x1x32xf32, #tpu.memory_space<vmem>>, vector<1x1x32xf32>
    %102 = vector.shape_cast %101 : vector<1x1x32xf32> to vector<1x32xf32>
    %c0_50 = arith.constant 0 : index
    %c0_51 = arith.constant 0 : index
    %c0_52 = arith.constant 0 : index
    %103 = vector.load %arg16[%c0_50, %c0_51, %c0_52] : memref<1x1x32xf32, #tpu.memory_space<vmem>>, vector<1x1x32xf32>
    %104 = vector.shape_cast %103 : vector<1x1x32xf32> to vector<1x32xf32>
    %cst_53 = arith.constant dense<0.000000e+00> : vector<16xf32>
    %105 = vector.multi_reduction <add>, %100, %cst_53 [1] : vector<16x32xf32> to vector<16xf32>
    %106 = vector.shape_cast %105 : vector<16xf32> to vector<16x1xf32>
    %cst_54 = arith.constant 3.200000e+01 : f32
    %107 = vector.broadcast %cst_54 : f32 to vector<16x1xf32>
    %108 = arith.divf %106, %107 : vector<16x1xf32>
    %109 = arith.mulf %100, %100 : vector<16x32xf32>
    %cst_55 = arith.constant dense<0.000000e+00> : vector<16xf32>
    %110 = vector.multi_reduction <add>, %109, %cst_55 [1] : vector<16x32xf32> to vector<16xf32>
    %111 = vector.shape_cast %110 : vector<16xf32> to vector<16x1xf32>
    %cst_56 = arith.constant 3.200000e+01 : f32
    %112 = vector.broadcast %cst_56 : f32 to vector<16x1xf32>
    %113 = arith.divf %111, %112 : vector<16x1xf32>
    %114 = arith.mulf %108, %108 : vector<16x1xf32>
    %115 = arith.subf %113, %114 : vector<16x1xf32>
    %116 = vector.broadcast %108 : vector<16x1xf32> to vector<16x32xf32>
    %117 = arith.subf %100, %116 : vector<16x32xf32>
    %cst_57 = arith.constant 9.99999974E-6 : f32
    %118 = vector.broadcast %cst_57 : f32 to vector<16x1xf32>
    %119 = arith.addf %115, %118 : vector<16x1xf32>
    %120 = math.rsqrt %119 : vector<16x1xf32>
    %121 = vector.broadcast %120 : vector<16x1xf32> to vector<16x32xf32>
    %122 = arith.mulf %117, %121 : vector<16x32xf32>
    %123 = vector.broadcast %102 : vector<1x32xf32> to vector<16x32xf32>
    %124 = arith.mulf %122, %123 : vector<16x32xf32>
    %125 = vector.broadcast %104 : vector<1x32xf32> to vector<16x32xf32>
    %126 = arith.addf %124, %125 : vector<16x32xf32>
    %c0_58 = arith.constant 0 : index
    %c0_59 = arith.constant 0 : index
    %127 = vector.load %arg18[%c0_58, %c0_59] : memref<16x32xf32, #tpu.memory_space<vmem>>, vector<16x32xf32>
    tpu.vector_store %arg18[%c0_58, %c0_59], %126 {strides = array<i32>} : memref<16x32xf32, #tpu.memory_space<vmem>>, vector<16x32xf32>,
    %c1_i32 = arith.constant 1 : i32
    %128 = arith.cmpi eq, %arg1, %c1_i32 : i32
    %129 = arith.extui %128 : i1 to i32
    %c0_i32_60 = arith.constant 0 : i32
    %130 = arith.cmpi ne, %129, %c0_i32_60 : i32
    scf.if %130 {
      %131 = vector.shape_cast %126 : vector<16x32xf32> to vector<2x8x32xf32>
      %132 = arith.truncf %131 : vector<2x8x32xf32> to vector<2x8x32xbf16>
      %c0_61 = arith.constant 0 : index
      %c0_62 = arith.constant 0 : index
      %c0_63 = arith.constant 0 : index
      %133 = vector.load %arg17[%c0_61, %c0_62, %c0_63] : memref<2x8x32xbf16, #tpu.memory_space<vmem>>, vector<2x8x32xbf16>
      tpu.vector_store %arg17[%c0_61, %c0_62, %c0_63], %132 {strides = array<i32>} : memref<2x8x32xbf16, #tpu.memory_space<vmem>>, vector<2x8x32xbf16>,
    } else {
    }
    return
  }
  func.func @transform_0(%arg0: i32, %arg1: i32) -> (i32, i32, i32) {
    %c0_i32 = arith.constant 0 : i32
    %c0_i32_0 = arith.constant 0 : i32
    %c0_i32_1 = arith.constant 0 : i32
    return %arg0, %c0_i32, %c0_i32_0 : i32, i32, i32
  }
  func.func @transform_1(%arg0: i32, %arg1: i32) -> (i32, i32) {
    %c0_i32 = arith.constant 0 : i32
    %c0_i32_0 = arith.constant 0 : i32
    %c0_i32_1 = arith.constant 0 : i32
    return %c0_i32, %c0_i32_0 : i32, i32
  }
  func.func @transform_2(%arg0: i32, %arg1: i32) -> (i32, i32) {
    %c0_i32 = arith.constant 0 : i32
    %c0_i32_0 = arith.constant 0 : i32
    %c0_i32_1 = arith.constant 0 : i32
    return %c0_i32, %c0_i32_0 : i32, i32
  }
  func.func @transform_3(%arg0: i32, %arg1: i32) -> (i32, i32, i32) {
    %c0_i32 = arith.constant 0 : i32
    %c0_i32_0 = arith.constant 0 : i32
    %c0_i32_1 = arith.constant 0 : i32
    return %arg1, %c0_i32, %c0_i32_0 : i32, i32, i32
  }
  func.func @transform_4(%arg0: i32, %arg1: i32) -> (i32, i32, i32) {
    %c0_i32 = arith.constant 0 : i32
    %c0_i32_0 = arith.constant 0 : i32
    %c0_i32_1 = arith.constant 0 : i32
    return %arg1, %c0_i32, %c0_i32_0 : i32, i32, i32
  }
  func.func @transform_5(%arg0: i32, %arg1: i32) -> (i32, i32, i32) {
    %c0_i32 = arith.constant 0 : i32
    %c0_i32_0 = arith.constant 0 : i32
    %c0_i32_1 = arith.constant 0 : i32
    return %arg1, %c0_i32, %c0_i32_0 : i32, i32, i32
  }
  func.func @transform_6(%arg0: i32, %arg1: i32) -> (i32, i32, i32) {
    %c0_i32 = arith.constant 0 : i32
    %c0_i32_0 = arith.constant 0 : i32
    %c0_i32_1 = arith.constant 0 : i32
    return %arg1, %c0_i32, %c0_i32_0 : i32, i32, i32
  }
  func.func @transform_7(%arg0: i32, %arg1: i32) -> (i32, i32, i32) {
    %c0_i32 = arith.constant 0 : i32
    %c0_i32_0 = arith.constant 0 : i32
    %c0_i32_1 = arith.constant 0 : i32
    return %arg1, %c0_i32, %c0_i32_0 : i32, i32, i32
  }
  func.func @transform_8(%arg0: i32, %arg1: i32) -> (i32, i32, i32) {
    %c0_i32 = arith.constant 0 : i32
    %c0_i32_0 = arith.constant 0 : i32
    %c0_i32_1 = arith.constant 0 : i32
    return %arg1, %c0_i32, %c0_i32_0 : i32, i32, i32
  }
  func.func @transform_9(%arg0: i32, %arg1: i32) -> (i32, i32, i32) {
    %c0_i32 = arith.constant 0 : i32
    %c0_i32_0 = arith.constant 0 : i32
    %c0_i32_1 = arith.constant 0 : i32
    return %arg1, %c0_i32, %c0_i32_0 : i32, i32, i32
  }
  func.func @transform_10(%arg0: i32, %arg1: i32) -> (i32, i32, i32) {
    %c0_i32 = arith.constant 0 : i32
    %c0_i32_0 = arith.constant 0 : i32
    %c0_i32_1 = arith.constant 0 : i32
    return %arg1, %c0_i32, %c0_i32_0 : i32, i32, i32
  }
  func.func @transform_11(%arg0: i32, %arg1: i32) -> (i32, i32, i32) {
    %c0_i32 = arith.constant 0 : i32
    %c0_i32_0 = arith.constant 0 : i32
    %c0_i32_1 = arith.constant 0 : i32
    return %arg1, %c0_i32, %c0_i32_0 : i32, i32, i32
  }
  func.func @transform_12(%arg0: i32, %arg1: i32) -> (i32, i32, i32) {
    %c0_i32 = arith.constant 0 : i32
    %c0_i32_0 = arith.constant 0 : i32
    %c0_i32_1 = arith.constant 0 : i32
    return %arg1, %c0_i32, %c0_i32_0 : i32, i32, i32
  }
  func.func @transform_13(%arg0: i32, %arg1: i32) -> (i32, i32, i32) {
    %c0_i32 = arith.constant 0 : i32
    %c0_i32_0 = arith.constant 0 : i32
    %c0_i32_1 = arith.constant 0 : i32
    return %arg1, %c0_i32, %c0_i32_0 : i32, i32, i32
  }
  func.func @transform_14(%arg0: i32, %arg1: i32) -> (i32, i32, i32) {
    %c0_i32 = arith.constant 0 : i32
    %c0_i32_0 = arith.constant 0 : i32
    %c0_i32_1 = arith.constant 0 : i32
    return %arg1, %c0_i32, %c0_i32_0 : i32, i32, i32
  }
  func.func @transform_15(%arg0: i32, %arg1: i32) -> (i32, i32, i32) {
    %c0_i32 = arith.constant 0 : i32
    %c0_i32_0 = arith.constant 0 : i32
    %c0_i32_1 = arith.constant 0 : i32
    return %arg0, %c0_i32, %c0_i32_0 : i32, i32, i32
  }
}

</mosaic_0001>

<bundles_post_ra>
// kernel: tpu_custom_call.1
= control target key start
LH: loop header
LB: loop body
LE: loop exit
PB: predicated region body
PF: predicated region fallthrough
CT: control target
= control target key end

     0   :  { %s4139_s0 = inlined_call_operand.hbm [shape: f32[2,8,32], index: 0, kind: input, shape index: {}]   ;;  %s4140_s1 = inlined_call_operand.hbm [shape: f32[8,32], index: 1, kind: input, shape index: {}]   ;;  %s4141_s2 = inlined_call_operand.hbm [shape: f32[8,8], index: 2, kind: input, shape index: {}]   ;;  %s4142_s3 = inlined_call_operand.vmem [shape: bf16[2,32,96], index: 3, kind: input, shape index: {}]   ;;  %s4143_s4 = inlined_call_operand.vmem [shape: f32[2,1,96], index: 4, kind: input, shape index: {}]   ;;  %s4144_s5 = inlined_call_operand.vmem [shape: bf16[2,32,32], index: 5, kind: input, shape index: {}]   ;;  %s4145_s6 = inlined_call_operand.vmem [shape: f32[2,1,32], index: 6, kind: input, shape index: {}]   ;;  %s4146_s7 = inlined_call_operand.hbm [shape: f32[2,1,32], index: 7, kind: input, shape index: {}]   ;;  %s4147_s8 = inlined_call_operand.vmem [shape: f32[2,1,32], index: 8, kind: input, shape index: {}]   ;;  %s4148_s9 = inlined_call_operand.vmem [shape: bf16[2,32,64], index: 9, kind: input, shape index: {}]   ;;  %s4149_s10 = inlined_call_operand.vmem [shape: f32[2,1,64], index: 10, kind: input, shape index: {}]   ;;  %s4150_s11 = inlined_call_operand.vmem [shape: bf16[2,64,32], index: 11, kind: input, shape index: {}]   ;;  %s4151_s12 = inlined_call_operand.vmem [shape: f32[2,1,32], index: 12, kind: input, shape index: {}]   ;;  %s4152_s13 = inlined_call_operand.hbm [shape: f32[2,1,32], index: 13, kind: input, shape index: {}]   ;;  %s4153_s14 = inlined_call_operand.vmem [shape: f32[2,1,32], index: 14, kind: input, shape index: {}]   ;;  %s4154_s15 = inlined_call_operand.hbm [shape: bf16[2,8,32], index: 15, kind: output, shape index: {}]  }
   0x1   :  { %4160 = sst [smem:[#allocation23_spill]] %s4139_s0 }
   0x2   :  { %4161 = sst [smem:[#allocation24_spill]] %s4140_s1 }
   0x3   :  { %4162 = sst [smem:[#allocation25_spill]] %s4141_s2 }
   0x4   :  { %4163 = sst [smem:[#allocation26_spill]] %s4142_s3 }
   0x5   :  { %4164 = sst [smem:[#allocation27_spill]] %s4144_s5 }
   0x6   :  { %4165 = sst [smem:[#allocation28_spill]] %s4146_s7 }
   0x7   :  { %4166 = sst [smem:[#allocation29_spill]] %s4147_s8 }
   0x8   :  { %4167 = sst [smem:[#allocation30_spill]] %s4148_s9 }
   0x9   :  { %4168 = sst [smem:[#allocation31_spill]] %s4149_s10 }
   0xa   :  { %4169 = sst [smem:[#allocation32_spill]] %s4150_s11 }
   0xb   :  { %4170 = sst [smem:[#allocation33_spill]] %s4151_s12 }
   0xc   :  { %4171 = sst [smem:[#allocation34_spill]] %s4152_s13 }
   0xd   :  { %4172 = sst [smem:[#allocation35_spill]] %s4153_s14 }
   0xe   :  { %4173 = sst [smem:[#allocation36_spill]] %s4154_s15 }
   0xf   :  { %20 = vsyncpa [#allocation4], 0 }
  0x10   :  { %21 = vsyncpa [#allocation7], 0 }
  0x11   :  { %22 = vsyncpa [#allocation10], 0 }
  0x12   :  { %24 = vsyncpa [#allocation10 + $0x1], 0 }
  0x13   :  { %25 = vsyncpa [#allocation5], 0  ;;  %s3383_s18 = smov 0   ;;  %s3385_s19 = smov 0  }
  0x14   :  { %s3387_s20 = smov 0   ;;  %s3389_s21 = smov 0  }
  0x15   :  { %s3391_s22 = smov 0   ;;  %s3393_s23 = smov 0  }
  0x16 LB: > { %4174 = sst [smem:[#allocation17_spill]] %s3267_s19  ;;  %s3412_s24 = sadd.s32 4294967295, %s3283_s23   ;;  %s3283_s23 = sphi %s3393_s23, %s31_s23   ;;  %s3279_s22 = sphi %s3391_s22, %s4210_s22   ;;  %s3275_s21 = sphi %s3389_s21, %s4209_s21   ;;  %s3271_s20 = sphi %s3387_s20, %s4208_s20   ;;  %s3267_s19 = sphi %s3385_s19, %s4207_s19   ;;  %s3263_s18 = sphi %s3383_s18, %s4206_s18  }
  0x17   : > { %4175 = sst [smem:[#allocation18_spill]] %s3271_s20  ;;  %p235_p0 = scmp.ne.s32.totalorder %s3267_s19, %s3263_s18 }
  0x18   : > { %4176 = sst [smem:[#allocation19_spill]] %s3279_s22  ;;  %p236_p1 = scmp.eq.s32.totalorder %s3412_s24, 0 }
  0x19   : > { %4177 = sst [smem:[#allocation20_spill]] %s3283_s23  ;;  %p2727_p2 = scmp.ge.s32.totalorder %s3283_s23, 1 }
  0x1a   : > { %p454_p3 = scmp.lt.s32.totalorder %s3283_s23, 3  ;;  %p3420_p4 = por %p236_p1, %p235_p0 }
  0x1b   : > { %s4179_s1 = sld [smem:[#allocation24_spill]]  ;;  %s3285_s30 = smov [#allocation6]  }
  0x1c   : > { %p3427_p5 = pnand %p2727_p2, %p454_p3  ;;  %s485_s16 = sshll.u32 %s3285_s30, 4  ;;  %s486_s16 = int_to_ptr.vmem [resolvable:$true] %s485_s16 }
  0x1d   : > { %s40_s18 = sadd.s32 1, %s3279_s22  ;;  %s222_s26 = sadd.s32 1, %s3271_s20 }
  0x1e   : > { %p2844_p6 = pneg %p3427_p5  ;;  %p41_p8 = scmp.ge.s32.totalorder %s40_s18, 2 }
  0x1f   : > { %p229_p9 = scmp.ne.s32.totalorder %s3271_s20, %s3267_s19  ;;  %p230_p10 = scmp.eq.s32.totalorder %s3283_s23, 0 }
  0x20   : > { %p3435_p7 = pnand %p2844_p6, %p236_p1  ;;  %s4212_s18 = smov (%p41_p8, %s40_s18), 0 }
  0x21   : > { %s483_s28 = sshll.u32 %s4179_s1, 4  ;;  %4182 = sst [smem:[#allocation21_spill]] %s4212_s18  ;;  %s484_s28 = int_to_ptr.hbm [resolvable:$true] %s483_s28 }
  0x22   : > { %2850 = dma.hbm_to_vmem [thread:$0]  (!%p3435_p7), %s484_s28, 128, %s486_s16, [#allocation7]  }
  0x23   : > { %p3448_p11 = por %p230_p10, %p229_p9  ;;  %p2864_p12 = scmp.lt.s32.totalorder %s3283_s23, 2 }
  0x24   : > { %s219_s30 = ssub.s32 %s3279_s22, %s4212_s18  ;;  %s536_s1 = sand.u32 1, %s3283_s23  }
  0x25   : > { %p220_p13 = scmp.eq.s32.totalorder %s219_s30, 0  ;;  %s538_s15 = sand.u32 1, %s3271_s20  }
  0x26   : > { %s4184_s7 = sld [smem:[#allocation28_spill]]  ;;  %s539_s10 = scalar_lea.vmem [#allocation9], %s538_s15 }
  0x27   : > { %s3462_s16 = scalar_select %p220_p13, %s3271_s20, %s222_s26  }
  0x28   : > { %s546_s9 = sshll.u32 %s539_s10, 4  ;;  %p3466_p0 = pnand %p2864_p12, %p3448_p11  ;;  %s547_s9 = int_to_ptr.vmem [resolvable:$true] %s546_s9 }
  0x29   : > { %4185 = sst [smem:[#allocation22_spill]] %s3462_s16  ;;  %s537_s30 = scalar_lea.sflag [#allocation10], %s536_s1 }
  0x2a   : > { %s4187_s0 = sld [smem:[#allocation23_spill]]  ;;  %s3287_s16 = smov 128  }
  0x2b   : > { %s4188_s2 = sld [smem:[#allocation25_spill]]  ;;  %s3288_s20 = smov 8  }
  0x2c   : > { %s542_s28 = scalar_lea.hbm %s4184_s7, %s3279_s22  ;;  %s3289_s1 = smov [#allocation8]  }
  0x2d   : > { %s544_s12 = sshll.u32 %s542_s28, 4  ;;  %s3286_s28 = smov [#allocation3]   ;;  %s545_s12 = int_to_ptr.hbm [resolvable:$true] %s544_s12 }
  0x2e   : > { %2857 = dma.hbm_to_vmem [thread:$0]  (!%p3466_p0), %s545_s12, 16, %s547_s9, %s537_s30  }
  0x2f   : > { %s470_s7 = sshll.u32 %s3286_s28, 4  ;;  %s497_s9 = sshll.u32 %s3289_s1, 4  ;;  %s471_s7 = int_to_ptr.vmem [resolvable:$true] %s470_s7  ;;  %s498_s9 = int_to_ptr.vmem [resolvable:$true] %s497_s9 }
  0x30   : > { %s468_s26 = sshll.u32 %s4187_s0, 4  ;;  %s4189_s13 = sld [smem:[#allocation34_spill]]  ;;  %s469_s26 = int_to_ptr.hbm [resolvable:$true] %s468_s26 }
  0x31   : > { %s495_s18 = sshll.u32 %s4188_s2, 4  ;;  %s590_s28 = scalar_lea.vmem [#allocation11], %s538_s15  ;;  %s496_s18 = int_to_ptr.hbm [resolvable:$true] %s495_s18 }
  0x32   : > { %2847 = dma.hbm_to_vmem [thread:$0]  (!%p3435_p7), %s469_s26, 256, %s471_s7, [#allocation4], %s3287_s16, %s3287_s16, %s3288_s20  }
  0x33   : > { %2853 = dma.hbm_to_vmem [thread:$0]  (!%p3435_p7), %s496_s18, 128, %s498_s9, [#allocation7]  }
  0x34   : > { %s597_s10 = sshll.u32 %s590_s28, 4  ;;  %612 = sbr.rel (%p3427_p5) target bundleno = 1936 (0x790), region = 80  ;;  %s598_s10 = int_to_ptr.vmem [resolvable:$true] %s597_s10 }
  0x36   : > { %s593_s14 = scalar_lea.hbm %s4189_s13, %s3279_s22 }
  0x37   : > { %s595_s0 = sshll.u32 %s593_s14, 4  ;;  %s596_s0 = int_to_ptr.hbm [resolvable:$true] %s595_s0 }
  0x38   : > { %2860 = dma.hbm_to_vmem [thread:$0]  (!%p3466_p0), %s596_s0, 16, %s598_s10, %s537_s30  }
  0x39   : > { %3246 = dma.done.wait (%p236_p1), [#allocation4], 256  }
  0x3a   : > { %3248 = vsyncadd (%p236_p1), [#allocation4], 4294967040 }
  0x3b   : > { %3250 = dma.done.wait (%p236_p1), [#allocation7], 256  }
  0x3c   : > { %3252 = vsyncadd (%p236_p1), [#allocation7], 4294967040  ;;  %s629_s7 = sand.u32 1, %s3412_s24   ;;  %s631_s0 = sand.u32 1, %s3267_s19  }
  0x3d   : > { %s630_s8 = scalar_lea.sflag [#allocation10], %s629_s7  ;;  %s3500_s15 = scalar_lea.vmem [#allocation9], %s631_s0 }
  0x3e   : > { %3254 = dma.done.wait (%p3420_p4), %s630_s8, 32  }
  0x3f   : > { %3256 = vsyncadd (%p3420_p4), %s630_s8, 4294967264  ;;  %p726_p2 = scmp.lt.s32.totalorder %s3275_s21, 1  ;;  %s4190_s3 = sld [smem:[#allocation26_spill]] }
  0x40   : > { %s4191_s5 = sld [smem:[#allocation27_spill]]  ;;  %p2744_p1 = scmp.ne.s32.totalorder %s3275_s21, 0 }
  0x41   : > { %s3508_s20 = scalar_select %p726_p2, %s3275_s21, 1 }
  0x42   : > { %s4192_s7 = sld [smem:[#allocation29_spill]] }
  0x43   : > { %s2810_s29 = sshll.u32 %s3508_s20, 4  ;;  %s4193_s18 = sld [smem:[#allocation30_spill]] }
  0x44   : > { %s2813_s27 = sshll.u32 %s3508_s20, 5  ;;  %s4195_s22 = sld [smem:[#allocation33_spill]] }
  0x45   : > { %s730_s26 = scalar_lea.vmem %s4190_s3, %s2810_s29  ;;  %s4194_s3 = sld [smem:[#allocation31_spill]] }
  0x46   : > { %s3521_s9 = scalar_lea.vmem %s4191_s5, %s2810_s29  ;;  %s4196_s14 = sld [smem:[#allocation32_spill]] }
  0x48   : > { %s744_s8 = scalar_lea.vmem %s4192_s7, %s3508_s20  ;;  %s4197_s7 = sld [smem:[#allocation35_spill]] }
  0x49   : > { %s3534_s16 = scalar_lea.vmem %s4193_s18, %s2810_s29  ;;  %s3554_s29 = scalar_lea.vmem [#allocation11], %s631_s0 }
  0x4a   : > { %s760_s19 = scalar_lea.vmem %s4195_s22, %s3508_s20  ;;  %769 = sbr.rel (%p2744_p1) target bundleno = 86 (0x56), region = 104 }
  0x4b   : > { %s752_s13 = scalar_lea.vmem %s4194_s3, %s3508_s20 }
  0x4c   : > { %s3548_s23 = scalar_lea.vmem %s4196_s14, %s2813_s27 }
  0x4e   : > { %s763_s2 = scalar_lea.vmem %s4197_s7, %s3508_s20 }
  0x4f   : > { %v770_v0 = vld [vmem:[#allocation3] sm:$0xff]  ;;  %v774_v1 = vld [vmem:[#allocation6] sm:$0xff]  ;;  %v771_v2 = vld [vmem:[#allocation3 + $0x8] sm:$0xff]  ;;  %vm777_vm0 = vcmask 261120  }
  0x50   : > { %v772_v3 = vmul.f32 5.656854, %v770_v0  ;;  %v773_v4 = vmul.f32 5.656854, %v771_v2 }
  0x52   : > { %v775_v5 = vadd.f32 %v774_v1, %v772_v3  ;;  %v776_v6 = vadd.f32 %v774_v1, %v773_v4 }
  0x54   : > { %778 = vst.msk [vmem:[#allocation2] sm:$0xff] %vm777_vm0, %v775_v5 }
  0x55   : > { %779 = vst.msk [vmem:[#allocation2 + $0x8] sm:$0xff] %vm777_vm0, %v776_v6 }
  0x56 PF: > { %v2815_v7 = vld [vmem:[%s730_s26 + $0x8] sm:$0xff]  ;;  %v2814_v8 = vld [vmem:[%s730_s26] sm:$0xff]  ;;  %vm804_vm1 = vcmask 261120   ;;  %s4198_s22 = scalar_lea.vmem %s4143_s4, %s3508_s20  ;;  %s3290_s0 = smov 104   ;;  %vm843_vm2 = vcmask 1047556   ;;  %vm1575_vm3 = vcmask 64512  }
  0x57   : > { %814 = vmatpush.bf16.msra.mxu0 %v2815_v7  ;;  %v2991_v12 = vld [vmem:[%s4198_s22] ss:$0 sm:$0xff]  ;;  %s3291_s14 = smov 120   ;;  %s3292_s26 = smov 112   ;;  %v3293_v23 = vmov 1983009808  }
  0x58   : > { %v848_v24 = vunpack.c.l.s4 %v3293_v23  ;;  %s3294_s17 = smov 96   ;;  %v3295_v33 = vmov 1934713408   ;;  %s3296_s18 = smov 64   ;;  %vm1827_vm4 = vcmask 1043456   ;;  %vm2223_vm5 = vcmask 130048  }
  0x59   : > { %v872_v34 = vunpack.c.l.s4 %v3295_v33  ;;  %s3297_s25 = smov 24   ;;  %s3298_s30 = smov 16   ;;  %vm2226_vm6 = vcmask 195584   ;;  %vm2413_vm14 = vcmask 523264  }
  0x5a   : > { %v3575_v27 = vunpack.c.0.s8 %v848_v24  ;;  %s3299_s27 = smov 8   ;;  %s4199_s12 = scalar_lea.vmem %s4145_s6, %s3508_s20 }
  0x5b   : > { %v780_v9 = vld [vmem:[#allocation2] sm:$0xff]  ;;  %815 = vmatpush.bf16.msra.mxu0 %v2814_v8  ;;  %v3599_v45 = vunpack.c.0.s8 %v872_v34  ;;  %p2805_p3 = scmp.ne.s32.totalorder %s3275_s21, 1 }
  0x5c   : > { %v781_v10 = vld [vmem:[#allocation2 + $0x8] sm:$0xff] }
  0x5d   : > { %v782_v11 = vpack.c.bf16 %v781_v10, %v780_v9 }
  0x5f   : > { %2753 = vmatmul.msk.bf16.vlgmr.msra.gmra.mxu0 %vm804_vm1, %v782_v11 }
  0xdc   : > { %v817_v13 = vpop.f32.mrf.mxu0 }
  0xdd   : > { %v818_v14 = vadd.f32 %v2991_v12, %v817_v13 }
  0xdf   : > { %836 = vrot.lane.b32.xlu1 %v818_v14, %s3290_s0  ;;  %824 = vrot.lane.b32.xlu0 %v818_v14, %s3291_s14  ;;  %v845_v31 = vrot.slane %v818_v14, 4 }
  0xe4   : > { %v819_v15 = vpop.f32.mrf.mxu0 }
  0xe5   : > { %v3563_v16 = vadd.f32 %v2991_v12, %v819_v15 }
  0xe7   : > { %832 = vrot.lane.b32.xlu2 %v3563_v16, %s3292_s26  ;;  %826 = vrot.lane.b32.xlu1 %v3563_v16, %s3291_s14 }
  0xe8   : > { %830 = vrot.lane.b32.xlu0 %v818_v14, %s3292_s26 }
  0xef   : > { %838 = vrot.lane.b32.xlu2 %v3563_v16, %s3290_s0 }
 0x141   : > { %v3568_v17 = vpop.permute.xlu2 %832 }
 0x149   : > { %v3577_v28 = vpop.permute.xlu2 %838 }
 0x14a   : > { %v3589_v37 = vpack.i.bf16 %v3577_v28, %v3568_v17 }
 0x151   : > { %v837_v18 = vpop.permute.xlu1 %836  ;;  %v825_v19 = vpop.permute.xlu0 %824 }
 0x152   : > { %v855_v20 = vrot.slane %v837_v18, 4  ;;  %v857_v21 = vrot.slane %v825_v19, 4  ;;  %v3570_v22 = vpack.i.bf16 %v825_v19, %v818_v14 }
 0x154   : > { %v856_v25 = vsel %vm843_vm2, %v855_v20, %v825_v19  ;;  %v858_v26 = vsel %vm843_vm2, %v837_v18, %v857_v21  ;;  %2937 = vrot.lane.b32.xlu0 %v3570_v22, %s3294_s17 }
 0x155   : > { %v866_v29 = vperm.slane %v858_v26, %v3575_v27  ;;  %v862_v32 = vperm.slane %v856_v25, %v3575_v27 }
 0x157   : > { %v879_v42 = vrot.slane %v866_v29, 4  ;;  %v867_v44 = vrot.slane %v862_v32, 4 }
 0x159   : > { %v3580_v30 = vpop.permute.xlu1 %826 }
 0x15a   : > { %v831_v35 = vpop.permute.xlu0 %830  ;;  %v3585_v36 = vpack.i.bf16 %v3580_v30, %v3563_v16 }
 0x15b   : > { %v842_v38 = vrot.slane %v831_v35, 4  ;;  %v846_v39 = vsel %vm843_vm2, %v831_v35, %v845_v31  ;;  %v3592_v40 = vpack.i.bf16 %v837_v18, %v831_v35 }
 0x15c   : > { %v854_v41 = vperm.slane %v846_v39, %v3575_v27  ;;  %2947 = vrot.lane.b32.xlu2 %v3585_v36, %s3294_s17  ;;  %2952 = vrot.lane.b32.xlu0 %v3589_v37, %s3294_s17  ;;  %v899_v39 = vrot.slane %v3568_v17, 4 }
 0x15d   : > { %v844_v43 = vsel %vm843_vm2, %v842_v38, %v818_v14  ;;  %2942 = vrot.lane.b32.xlu1 %v3592_v40, %s3294_s17 }
 0x15e   : > { %v850_v46 = vperm.slane %v844_v43, %v3575_v27  ;;  %v881_v47 = vrot.slane %v854_v41, 4  ;;  %v880_v48 = vsel %vm843_vm2, %v879_v42, %v854_v41  ;;  %v911_v41 = vrot.slane %v3577_v28, 4 }
 0x15f   : > { %v886_v52 = vperm.slane %v880_v48, %v3599_v45  ;;  %v900_v42 = vsel %vm843_vm2, %v899_v39, %v3563_v16 }
 0x160   : > { %v868_v49 = vsel %vm843_vm2, %v867_v44, %v850_v46  ;;  %v869_v50 = vrot.slane %v850_v46, 4  ;;  %v882_v51 = vsel %vm843_vm2, %v866_v29, %v881_v47  ;;  %v912_v43 = vsel %vm843_vm2, %v911_v41, %v3580_v30 }
 0x161   : > { %v874_v54 = vperm.slane %v868_v49, %v3599_v45  ;;  %v890_v55 = vperm.slane %v882_v51, %v3599_v45  ;;  %v895_v57 = vrot.slane %v886_v52, 4  ;;  %v913_v44 = vrot.slane %v3580_v30, 4 }
 0x162   : > { %v870_v53 = vsel %vm843_vm2, %v862_v32, %v869_v50  ;;  %v901_v46 = vrot.slane %v3563_v16, 4  ;;  %v906_v47 = vperm.slane %v900_v42, %v3575_v27  ;;  %v918_v49 = vperm.slane %v912_v43, %v3575_v27 }
 0x163   : > { %v878_v56 = vperm.slane %v870_v53, %v3599_v45  ;;  %v897_v58 = vrot.slane %v890_v55, 4  ;;  %v891_v59 = vrot.slane %v874_v54, 4  ;;  %v896_v3 = vsel %vm843_vm2, 0.0, %v895_v57 }
 0x164   : > { %v902_v48 = vsel %vm843_vm2, %v3568_v17, %v901_v46  ;;  %v914_v50 = vsel %vm843_vm2, %v3577_v28, %v913_v44 }
 0x165   : > { %v893_v60 = vrot.slane %v878_v56, 4  ;;  %v898_v61 = vsel %vm843_vm2, 0.0, %v897_v58  ;;  %v966_v62 = vsel %vm843_vm2, %v897_v58, %v886_v52  ;;  %v892_v6 = vsel %vm843_vm2, 0.0, %v891_v59 }
 0x166   : > { %v970_v63 = vperm.slane %v966_v62, %v3575_v27  ;;  %v971_v0 = vrot.slane %v898_v61, 4  ;;  %v910_v51 = vperm.slane %v902_v48, %v3575_v27  ;;  %v925_v52 = vrot.slane %v906_v47, 4 }
 0x167   : > { %v894_v1 = vsel %vm843_vm2, 0.0, %v893_v60  ;;  %v955_v2 = vsel %vm843_vm2, %v893_v60, %v874_v54  ;;  %v922_v53 = vperm.slane %v914_v50, %v3575_v27  ;;  %v923_v54 = vrot.slane %v918_v49, 4 }
 0x168   : > { %v959_v4 = vperm.slane %v955_v2, %v3575_v27  ;;  %v960_v5 = vrot.slane %v894_v1, 4  ;;  %v972_v7 = vsel %vm843_vm2, %v971_v0, %v896_v3  ;;  %v991_v8 = vrot.slane %v970_v63, 4 }
 0x169   : > { %v976_v10 = vperm.slane %v972_v7, %v3575_v27  ;;  %v926_v30 = vsel %vm843_vm2, %v918_v49, %v925_v52  ;;  %v937_v55 = vrot.slane %v910_v51, 4  ;;  %v924_v16 = vsel %vm843_vm2, %v923_v54, %v906_v47 }
 0x16a   : > { %v961_v9 = vsel %vm843_vm2, %v960_v5, %v892_v6  ;;  %v979_v11 = vrot.slane %v959_v4, 4  ;;  %v934_v56 = vperm.slane %v926_v30, %v3599_v45  ;;  %v935_v57 = vrot.slane %v922_v53, 4 }
 0x16b   : > { %v965_v12 = vperm.slane %v961_v9, %v3575_v27  ;;  %v992_v13 = vsel %vm843_vm2, %v976_v10, %v991_v8  ;;  %v989_v14 = vrot.slane %v976_v10, 4  ;;  %v938_v17 = vsel %vm843_vm2, %v922_v53, %v937_v55 }
 0x16c   : > { %v1000_v18 = vperm.slane %v992_v13, %v3599_v45  ;;  %v930_v58 = vperm.slane %v924_v16, %v3599_v45  ;;  %v936_v28 = vsel %vm843_vm2, %v935_v57, %v910_v51  ;;  %v946_v59 = vperm.slane %v938_v17, %v3599_v45 }
 0x16d   : > { %v980_v15 = vsel %vm843_vm2, %v965_v12, %v979_v11  ;;  %v977_v19 = vrot.slane %v965_v12, 4  ;;  %v990_v21 = vsel %vm843_vm2, %v989_v14, %v970_v63  ;;  %v949_v60 = vrot.slane %v934_v56, 4 }
 0x16e   : > { %v988_v20 = vperm.slane %v980_v15, %v3599_v45  ;;  %v1005_v23 = vrot.slane %v1000_v18, 4  ;;  %v996_v25 = vperm.slane %v990_v21, %v3599_v45  ;;  %v942_v61 = vperm.slane %v936_v28, %v3599_v45 }
 0x16f   : > { %v978_v24 = vsel %vm843_vm2, %v977_v19, %v959_v4  ;;  %v947_v62 = vrot.slane %v930_v58, 4  ;;  %v950_v0 = vsel %vm843_vm2, 0.0, %v949_v60  ;;  %v953_v1 = vrot.slane %v946_v59, 4 }
 0x170   : > { %v1007_v26 = vrot.slane %v988_v20, 4  ;;  %v984_v29 = vperm.slane %v978_v24, %v3599_v45  ;;  %v3631_v31 = vsel %vm843_vm2, %v1005_v23, %v988_v20  ;;  %v1001_v32 = vrot.slane %v996_v25, 4 }
 0x171   : > { %v948_v3 = vsel %vm843_vm2, 0.0, %v947_v62  ;;  %v951_v4 = vrot.slane %v942_v61, 4  ;;  %v1009_v5 = vsel %vm843_vm2, %v949_v60, %v930_v58  ;;  %v1014_v6 = vrot.slane %v950_v0, 4 }
 0x172   : > { %v3634_v33 = vsel %vm843_vm2, %v1000_v18, %v1007_v26  ;;  %v1003_v34 = vrot.slane %v984_v29, 4  ;;  %v3637_v35 = vsel %vm843_vm2, %v1001_v32, %v984_v29  ;;  %v3670_v7 = vsel %vm843_vm2, 0.0, %v953_v1 }
 0x173   : > { %v1020_v8 = vsel %vm843_vm2, %v953_v1, %v942_v61  ;;  %v3674_v13 = vperm.slane %v1009_v5, %v3575_v27  ;;  %v3677_v14 = vsel %vm843_vm2, 0.0, %v951_v4  ;;  %v1025_v15 = vrot.slane %v3670_v7, 4 }
 0x174   : > { %v3640_v38 = vsel %vm843_vm2, %v996_v25, %v1003_v34  ;;  %v3681_v19 = vsel %vm843_vm2, %v1014_v6, %v948_v3  ;;  %v3684_v20 = vperm.slane %v1020_v8, %v3575_v27 }
 0x1b6   : > { %v2948_v2 = vpop.permute.xlu2 %2947 }
 0x1b7   : > { %v2950_v9 = vunpack.i.h.bf16 %v2948_v2  ;;  %v2949_v10 = vunpack.i.l.bf16 %v2948_v2 }
 0x1b9   : > { %v1165_v21 = vrot.slane %v2950_v9, 4  ;;  %v1153_v23 = vrot.slane %v2949_v10, 4 }
 0x1c6   : > { %v2938_v63 = vpop.permute.xlu0 %2937 }
 0x1c7   : > { %v2940_v11 = vunpack.i.h.bf16 %v2938_v63  ;;  %v2939_v12 = vunpack.i.l.bf16 %v2938_v63 }
 0x1c9   : > { %v1109_v29 = vrot.slane %v2940_v11, 4  ;;  %v1097_v32 = vrot.slane %v2939_v12, 4 }
 0x1ce   : > { %v2953_v18 = vpop.permute.xlu0 %2952 }
 0x1cf   : > { %v2943_v24 = vpop.permute.xlu1 %2942  ;;  %v2955_v25 = vunpack.i.h.bf16 %v2953_v18  ;;  %v2954_v26 = vunpack.i.l.bf16 %v2953_v18 }
 0x1d0   : > { %v2945_v34 = vunpack.i.h.bf16 %v2943_v24  ;;  %v2944_v39 = vunpack.i.l.bf16 %v2943_v24 }
 0x1d1   : > { %v1163_v41 = vrot.slane %v2955_v25, 4  ;;  %v1166_v42 = vsel %vm843_vm2, %v2955_v25, %v1165_v21  ;;  %v1151_v43 = vrot.slane %v2954_v26, 4  ;;  %v1154_v44 = vsel %vm843_vm2, %v2954_v26, %v1153_v23 }
 0x1d2   : > { %v1107_v46 = vrot.slane %v2945_v34, 4  ;;  %v1095_v47 = vrot.slane %v2944_v39, 4  ;;  %v1098_v48 = vsel %vm843_vm2, %v2944_v39, %v1097_v32  ;;  %v1110_v49 = vsel %vm843_vm2, %v2945_v34, %v1109_v29 }
 0x1d3   : > { %v1106_v50 = vperm.slane %v1098_v48, %v3575_v27  ;;  %v1118_v51 = vperm.slane %v1110_v49, %v3575_v27  ;;  %v1164_v52 = vsel %vm843_vm2, %v1163_v41, %v2950_v9  ;;  %v1174_v53 = vperm.slane %v1166_v42, %v3575_v27 }
 0x1d4   : > { %v1096_v54 = vsel %vm843_vm2, %v1095_v47, %v2939_v12  ;;  %v1108_v30 = vsel %vm843_vm2, %v1107_v46, %v2940_v11  ;;  %v1170_v55 = vperm.slane %v1164_v52, %v3575_v27  ;;  %v1152_v16 = vsel %vm843_vm2, %v1151_v43, %v2949_v10 }
 0x1d5   : > { %v1102_v56 = vperm.slane %v1096_v54, %v3575_v27  ;;  %v1114_v57 = vperm.slane %v1108_v30, %v3575_v27  ;;  %v1131_v17 = vrot.slane %v1118_v51, 4  ;;  %v1133_v58 = vrot.slane %v1106_v50, 4 }
 0x1d6   : > { %v1175_v28 = vrot.slane %v1170_v55, 4  ;;  %v1187_v59 = vrot.slane %v1174_v53, 4  ;;  %v1158_v60 = vperm.slane %v1152_v16, %v3575_v27  ;;  %v1162_v61 = vperm.slane %v1154_v44, %v3575_v27 }
 0x1d7   : > { %v1119_v62 = vrot.slane %v1114_v57, 4  ;;  %v1121_v63 = vrot.slane %v1102_v56, 4  ;;  %v1132_v0 = vsel %vm843_vm2, %v1131_v17, %v1106_v50  ;;  %v1134_v1 = vsel %vm843_vm2, %v1118_v51, %v1133_v58 }
 0x1d8   : > { %v1138_v2 = vperm.slane %v1132_v0, %v3599_v45  ;;  %v1142_v3 = vperm.slane %v1134_v1, %v3599_v45  ;;  %v1176_v4 = vsel %vm843_vm2, %v1175_v28, %v1158_v60  ;;  %v1177_v5 = vrot.slane %v1158_v60, 4 }
 0x1d9   : > { %v1120_v6 = vsel %vm843_vm2, %v1119_v62, %v1102_v56  ;;  %v1122_v8 = vsel %vm843_vm2, %v1114_v57, %v1121_v63  ;;  %v1182_v9 = vperm.slane %v1176_v4, %v3599_v45  ;;  %v1188_v10 = vsel %vm843_vm2, %v1187_v59, %v1162_v61 }
 0x1da   : > { %v1126_v11 = vperm.slane %v1120_v6, %v3599_v45  ;;  %v1130_v12 = vperm.slane %v1122_v8, %v3599_v45  ;;  %v1147_v18 = vrot.slane %v1138_v2, 4  ;;  %v1149_v21 = vrot.slane %v1142_v3, 4 }
 0x1db   : > { %v1178_v23 = vsel %vm843_vm2, %v1170_v55, %v1177_v5  ;;  %v1189_v24 = vrot.slane %v1162_v61, 4  ;;  %v1194_v25 = vperm.slane %v1188_v10, %v3599_v45  ;;  %v1199_v26 = vrot.slane %v1182_v9, 4 }
 0x1dc   : > { %v1143_v29 = vrot.slane %v1126_v11, 4  ;;  %v1145_v32 = vrot.slane %v1130_v12, 4  ;;  %v1148_v34 = vsel %vm843_vm2, 0.0, %v1147_v18  ;;  %v1150_v39 = vsel %vm843_vm2, 0.0, %v1149_v21 }
 0x1dd   : > { %v1223_v41 = vrot.slane %v1150_v39, 4  ;;  %v1186_v42 = vperm.slane %v1178_v23, %v3599_v45  ;;  %v1190_v43 = vsel %vm843_vm2, %v1174_v53, %v1189_v24  ;;  %v1203_v44 = vrot.slane %v1194_v25, 4 }
 0x1de   : > { %v1146_v46 = vsel %vm843_vm2, 0.0, %v1145_v32  ;;  %v1198_v47 = vperm.slane %v1190_v43, %v3599_v45  ;;  %v1144_v48 = vsel %vm843_vm2, 0.0, %v1143_v29  ;;  %v1207_v49 = vsel %vm843_vm2, %v1145_v32, %v1126_v11 }
 0x1df   : > { %v1201_v50 = vrot.slane %v1186_v42, 4  ;;  %v1204_v51 = vsel %vm843_vm2, 0.0, %v1203_v44  ;;  %v1211_v52 = vperm.slane %v1207_v49, %v3575_v27  ;;  %v1212_v54 = vrot.slane %v1146_v46, 4 }
 0x1e0   : > { %v1205_v30 = vrot.slane %v1198_v47, 4  ;;  %v1218_v55 = vsel %vm843_vm2, %v1149_v21, %v1138_v2  ;;  %v1224_v53 = vsel %vm843_vm2, %v1223_v41, %v1148_v34  ;;  %v1200_v16 = vsel %vm843_vm2, 0.0, %v1199_v26 }
 0x1e1   : > { %v1202_v56 = vsel %vm843_vm2, 0.0, %v1201_v50  ;;  %v1213_v57 = vsel %vm843_vm2, %v1212_v54, %v1144_v48  ;;  %v1222_v17 = vperm.slane %v1218_v55, %v3575_v27  ;;  %v1228_v58 = vperm.slane %v1224_v53, %v3575_v27 }
 0x1e2   : > { %v1206_v28 = vsel %vm843_vm2, 0.0, %v1205_v30  ;;  %v1266_v59 = vrot.slane %v1202_v56, 4  ;;  %v1272_v60 = vsel %vm843_vm2, %v1205_v30, %v1194_v25  ;;  %v1217_v61 = vperm.slane %v1213_v57, %v3575_v27 }
 0x1e3   : > { %v1277_v62 = vrot.slane %v1206_v28, 4  ;;  %v1231_v63 = vrot.slane %v1211_v52, 4  ;;  %v1243_v0 = vrot.slane %v1222_v17, 4  ;;  %v1261_v1 = vsel %vm843_vm2, %v1201_v50, %v1182_v9 }
 0x1e4   : > { %v1265_v2 = vperm.slane %v1261_v1, %v3575_v27  ;;  %v1267_v3 = vsel %vm843_vm2, %v1266_v59, %v1200_v16  ;;  %v1276_v4 = vperm.slane %v1272_v60, %v3575_v27  ;;  %v1229_v5 = vrot.slane %v1217_v61, 4 }
 0x1e5   : > { %v1232_v6 = vsel %vm843_vm2, %v1217_v61, %v1231_v63  ;;  %v1244_v8 = vsel %vm843_vm2, %v1228_v58, %v1243_v0  ;;  %v1271_v10 = vperm.slane %v1267_v3, %v3575_v27  ;;  %v1278_v11 = vsel %vm843_vm2, %v1277_v62, %v1204_v51 }
 0x1e6   : > { %v1240_v12 = vperm.slane %v1232_v6, %v3599_v45  ;;  %v1252_v18 = vperm.slane %v1244_v8, %v3599_v45  ;;  %v1282_v9 = vperm.slane %v1278_v11, %v3575_v27  ;;  %v1285_v21 = vrot.slane %v1265_v2, 4 }
 0x1e7   : > { %v1297_v23 = vrot.slane %v1276_v4, 4  ;;  %v1230_v24 = vsel %vm843_vm2, %v1229_v5, %v1211_v52  ;;  %v1241_v25 = vrot.slane %v1228_v58, 4  ;;  %v1283_v26 = vrot.slane %v1271_v10, 4 }
 0x1e8   : > { %v1257_v29 = vrot.slane %v1252_v18, 4  ;;  %v1286_v32 = vsel %vm843_vm2, %v1271_v10, %v1285_v21  ;;  %v1236_v34 = vperm.slane %v1230_v24, %v3599_v45  ;;  %v1259_v39 = vrot.slane %v1240_v12, 4 }
 0x1e9   : > { %v1294_v41 = vperm.slane %v1286_v32, %v3599_v45  ;;  %v1298_v42 = vsel %vm843_vm2, %v1282_v9, %v1297_v23  ;;  %v1242_v43 = vsel %vm843_vm2, %v1241_v25, %v1222_v17  ;;  %v1284_v44 = vsel %vm843_vm2, %v1283_v26, %v1265_v2 }
 0x1ea   : > { %v1258_v46 = vsel %vm843_vm2, %v1257_v29, %v1240_v12  ;;  %v1306_v47 = vperm.slane %v1298_v42, %v3599_v45  ;;  %v1248_v48 = vperm.slane %v1242_v43, %v3599_v45  ;;  %v1260_v49 = vsel %vm843_vm2, %v1252_v18, %v1259_v39 }
 0x1eb   : > { %v1317_v50 = vpack.c.bf16 %v1258_v46, %v1258_v46  ;;  %v1313_v51 = vrot.slane %v1294_v41, 4  ;;  %v1318_v52 = vpack.c.bf16 %v1260_v49, %v1260_v49  ;;  %v1290_v54 = vperm.slane %v1284_v44, %v3599_v45 }
 0x1ec   : > { %v1311_v30 = vrot.slane %v1306_v47, 4  ;;  %v1253_v55 = vrot.slane %v1248_v48, 4  ;;  %v1295_v53 = vrot.slane %v1282_v9, 4  ;;  %v1255_v16 = vrot.slane %v1236_v34, 4 }
 0x1ed   : > { %v1618_v56 = vsel %vm1575_vm3, %v1317_v50, 0  ;;  %v1637_v57 = vsel %vm1575_vm3, %v1318_v52, 0  ;;  %v1314_v17 = vsel %vm843_vm2, %v1306_v47, %v1313_v51  ;;  %v1026_v58 = vsel %vm843_vm2, %v1025_v15, %v3677_v14 }
 0x1ee   : > { %1627 = vmatpush.bf16.xpose.msra.mxu3 %v1618_v56  ;;  %v1312_v28 = vsel %vm843_vm2, %v1311_v30, %v1294_v41  ;;  %v1254_v59 = vsel %vm843_vm2, %v1253_v55, %v1236_v34  ;;  %1646 = vmatpush.bf16.xpose.msrb.mxu0 %v1637_v57  ;;  %v1296_v60 = vsel %vm843_vm2, %v1295_v53, %v1276_v4  ;;  %v1309_v61 = vrot.slane %v1290_v54, 4  ;;  %v783_v55 = vld [vmem:[#allocation8] sm:$0xff] }
 0x1ef   : > { %v1321_v62 = vpack.c.bf16 %v1312_v28, %v1312_v28  ;;  %v1315_v63 = vpack.c.bf16 %v1254_v59, %v1254_v59  ;;  %v1302_v0 = vperm.slane %v1296_v60, %v3599_v45  ;;  %v1322_v1 = vpack.c.bf16 %v1314_v17, %v1314_v17 }
 0x1f0   : > { %v1256_v2 = vsel %vm843_vm2, %v1248_v48, %v1255_v16  ;;  %v1030_v7 = vperm.slane %v1026_v58, %v3575_v27  ;;  %v1045_v14 = vrot.slane %v3684_v20, 4  ;;  %v1019_v10 = vperm.slane %v3681_v19, %v3575_v27 }
 0x1f1   : > { %v1694_v15 = vsel %vm1575_vm3, %v1321_v62, 0  ;;  %v1580_v3 = vsel %vm1575_vm3, %v1315_v63, 0  ;;  %v1307_v5 = vrot.slane %v1302_v0, 4  ;;  %v1713_v6 = vsel %vm1575_vm3, %v1322_v1, 0 }
 0x1f2   : > { %1589 = vmatpush.bf16.xpose.msra.mxu1 %v1580_v3  ;;  %v1316_v4 = vpack.c.bf16 %v1256_v2, %v1256_v2  ;;  %v1310_v8 = vsel %vm843_vm2, %v1302_v0, %v1309_v61  ;;  %v1033_v11 = vrot.slane %v3674_v13, 4  ;;  %v1065_v9 = vpack.c.bf16 %v3631_v31, %v3631_v31 }
 0x1f3   : > { %v1308_v12 = vsel %vm843_vm2, %v1307_v5, %v1290_v54  ;;  %v1320_v18 = vpack.c.bf16 %v1310_v8, %v1310_v8  ;;  %v1066_v24 = vpack.c.bf16 %v3634_v33, %v3634_v33  ;;  %v1046_v19 = vsel %vm843_vm2, %v1030_v7, %v1045_v14 }
 0x1f4   : > { %v1319_v21 = vpack.c.bf16 %v1308_v12, %v1308_v12  ;;  %v1599_v23 = vsel %vm1575_vm3, %v1316_v4, 0  ;;  %v1043_v26 = vrot.slane %v1030_v7, 4  ;;  %v1034_v31 = vsel %vm843_vm2, %v1019_v10, %v1033_v11 }
 0x1f5   : > { %1608 = vmatpush.bf16.xpose.msra.mxu2 %v1599_v23  ;;  %v1675_v25 = vsel %vm1575_vm3, %v1320_v18, 0  ;;  %2756 = vmatmul.msk.bf16.vlgmr.msra.gmra.mxu3 %vm1575_vm3, %v1065_v9  ;;  %v1063_v32 = vpack.c.bf16 %v3637_v35, %v3637_v35  ;;  %v1054_v33 = vperm.slane %v1046_v19, %v3599_v45  ;;  %v1031_v34 = vrot.slane %v1019_v10, 4 }
 0x1f6   : > { %1703 = vmatpush.bf16.xpose.msrb.mxu3 %v1694_v15  ;;  %1722 = vmatpush.bf16.xpose.msra.mxu0 %v1713_v6  ;;  %v1656_v29 = vsel %vm1575_vm3, %v1319_v21, 0  ;;  %v1042_v39 = vperm.slane %v1034_v31, %v3599_v45  ;;  %v1044_v41 = vsel %vm843_vm2, %v1043_v26, %v3684_v20  ;;  %v1064_v42 = vpack.c.bf16 %v3640_v38, %v3640_v38 }
 0x1f7   : > { %2757 = vmatmul.msk.bf16.vlgmr.msrb.gmra.mxu0 %vm1575_vm3, %v1066_v24  ;;  %v1059_v43 = vrot.slane %v1054_v33, 4  ;;  %v1032_v44 = vsel %vm843_vm2, %v1031_v34, %v3674_v13  ;;  %v1050_v35 = vperm.slane %v1044_v41, %v3599_v45 }
 0x1f8   : > { %v1061_v46 = vrot.slane %v1042_v39, 4  ;;  %v1038_v47 = vperm.slane %v1032_v44, %v3599_v45 }
 0x1f9   : > { %2754 = vmatmul.msk.bf16.vlgmr.msra.gmra.mxu1 %vm1575_vm3, %v1063_v32  ;;  %v1060_v48 = vsel %vm843_vm2, %v1059_v43, %v1042_v39  ;;  %v1055_v49 = vrot.slane %v1050_v35, 4 }
 0x1fa   : > { %1665 = vmatpush.bf16.xpose.msrb.mxu1 %v1656_v29  ;;  %v1062_v50 = vsel %vm843_vm2, %v1054_v33, %v1061_v46  ;;  %v1069_v20 = vpack.c.bf16 %v1060_v48, %v1060_v48  ;;  %v1057_v51 = vrot.slane %v1038_v47, 4 }
 0x1fb   : > { %v1056_v38 = vsel %vm843_vm2, %v1055_v49, %v1038_v47  ;;  %v1070_v52 = vpack.c.bf16 %v1062_v50, %v1062_v50 }
 0x1fc   : > { %2755 = vmatmul.msk.bf16.vlgmr.msra.gmra.mxu2 %vm1575_vm3, %v1064_v42  ;;  %v1067_v13 = vpack.c.bf16 %v1056_v38, %v1056_v38  ;;  %v1058_v54 = vsel %vm843_vm2, %v1050_v35, %v1057_v51 }
 0x1fd   : > { %1684 = vmatpush.bf16.xpose.msrb.mxu2 %v1675_v25  ;;  %v1068_v30 = vpack.c.bf16 %v1058_v54, %v1058_v54 }
 0x205   : > { %2760 = vmatmul.msk.bf16.vlgmr.msrb.gmra.mxu3 %vm1575_vm3, %v1069_v20 }
 0x207   : > { %2761 = vmatmul.msk.bf16.vlgmr.msra.gmra.mxu0 %vm1575_vm3, %v1070_v52 }
 0x209   : > { %2758 = vmatmul.msk.bf16.vlgmr.msrb.gmra.mxu1 %vm1575_vm3, %v1067_v13 }
 0x20c   : > { %2759 = vmatmul.msk.bf16.vlgmr.msrb.gmra.mxu2 %vm1575_vm3, %v1068_v30 }
 0x274   : > { %v1648_v53 = vpop.f32.mrf.mxu0 }
 0x275   : > { %v1649_v16 = vadd.f32 %v1648_v53, %v783_v55 }
 0x276   : > { %v1591_v56 = vpop.f32.mrf.mxu1 }
 0x277   : > { %v1737_v57 = vsel %vm1575_vm3, %v1649_v16, -inf  ;;  %v1592_v17 = vadd.f32 %v1591_v56, %v783_v55 }
 0x278   : > { %1738 = vmax.xlane.f32.xlu2 %v1737_v57  ;;  %v1629_v58 = vpop.f32.mrf.mxu3 }
 0x279   : > { %v1630_v28 = vadd.f32 %v1629_v58, %v783_v55  ;;  %v1728_v59 = vsel %vm1575_vm3, %v1592_v17, -inf }
 0x27a   : > { %1729 = vmax.xlane.f32.xlu0 %v1728_v59 }
 0x27b   : > { %v1734_v61 = vsel %vm1575_vm3, %v1630_v28, -inf }
 0x27c   : > { %v1650_v60 = vpop.f32.mrf.mxu0  ;;  %1735 = vmax.xlane.f32.xlu1 %v1734_v61 }
 0x27e   : > { %v1593_v62 = vpop.f32.mrf.mxu1 }
 0x27f   : > { %v1610_v63 = vpop.f32.mrf.mxu2 }
 0x280   : > { %v1611_v0 = vadd.f32 %v1610_v63, %v783_v55  ;;  %v1631_v1 = vpop.f32.mrf.mxu3 }
 0x282   : > { %v1731_v2 = vsel %vm1575_vm3, %v1611_v0, -inf }
 0x283   : > { %1732 = vmax.xlane.f32.xlu2 %v1731_v2 }
 0x284   : > { %v1724_v7 = vpop.f32.mrf.mxu0 }
 0x285   : > { %v3817_v14 = vadd.f32 %v1724_v7, %v783_v55 }
 0x286   : > { %v1667_v15 = vpop.f32.mrf.mxu1 }
 0x287   : > { %v1749_v3 = vsel %vm1575_vm3, %v3817_v14, -inf  ;;  %v1612_v5 = vpop.f32.mrf.mxu2  ;;  %v1668_v6 = vadd.f32 %v1667_v15, %v783_v55 }
 0x288   : > { %1750 = vmax.xlane.f32.xlu1 %v1749_v3  ;;  %v1705_v4 = vpop.f32.mrf.mxu3 }
 0x289   : > { %v1740_v8 = vsel %vm1575_vm3, %v1668_v6, -inf  ;;  %v1706_v10 = vadd.f32 %v1705_v4, %v783_v55 }
 0x28a   : > { %1741 = vmax.xlane.f32.xlu0 %v1740_v8 }
 0x28b   : > { %v1746_v18 = vsel %vm1575_vm3, %v1706_v10, -inf }
 0x28c   : > { %v1726_v11 = vpop.f32.mrf.mxu0 }
 0x28e   : > { %v1669_v12 = vpop.f32.mrf.mxu1 }
 0x28f   : > { %v1686_v9 = vpop.f32.mrf.mxu2 }
 0x290   : > { %1747 = vmax.xlane.f32.xlu1 %v1746_v18  ;;  %v1687_v21 = vadd.f32 %v1686_v9, %v783_v55  ;;  %v1707_v23 = vpop.f32.mrf.mxu3 }
 0x292   : > { %v1743_v24 = vsel %vm1575_vm3, %v1687_v21, -inf }
 0x293   : > { %1744 = vmax.xlane.f32.xlu2 %v1743_v24 }
 0x297   : > { %v1688_v25 = vpop.f32.mrf.mxu2 }
 0x29e   : > { %2962 = vrot.lane.b32.xlu0 %v3592_v40, %s3296_s18 }
 0x2a6   : > { %2972 = vrot.lane.b32.xlu0 %v3589_v37, %s3296_s18 }
 0x2a9   : > { %2967 = vrot.lane.b32.xlu1 %v3585_v36, %s3296_s18 }
 0x2ab   : > { %2957 = vrot.lane.b32.xlu2 %v3570_v22, %s3296_s18 }
 0x2eb   : > { %v1739_v19 = vpop.xlane.xlu2 %1738 }
 0x2ec   : > { %v1755_v34 = vsub.f32 %v1649_v16, %v1739_v19 }
 0x2ed   : > { %v1730_v26 = vpop.xlane.xlu0 %1729 }
 0x2ee   : > { %v1752_v29 = vsub.f32 %v1592_v17, %v1730_v26  ;;  %v1766_v40 = vmul.f32 1.442695, %v1755_v34 }
 0x2ef   : > { %v1736_v31 = vpop.xlane.xlu1 %1735 }
 0x2f0   : > { %v1760_v32 = vmul.f32 1.442695, %v1752_v29  ;;  %v1754_v33 = vsub.f32 %v1630_v28, %v1736_v31 }
 0x2f2   : > { %2999 = vpow2.f32 %v1760_v32  ;;  %v1764_v39 = vmul.f32 1.442695, %v1754_v33 }
 0x2f4   : > { %3001 = vpow2.f32 %v1764_v39 }
 0x2f5   : > { %3003 = vpow2.f32 %v1766_v40 }
 0x2f6   : > { %v1733_v41 = vpop.xlane.xlu2 %1732 }
 0x2f7   : > { %v1753_v42 = vsub.f32 %v1611_v0, %v1733_v41 }
 0x2f8   : > { %v3832_v37 = vpop.eup %2999 }
 0x2f9   : > { %v1762_v43 = vmul.f32 1.442695, %v1753_v42  ;;  %v1776_v36 = vsel %vm1575_vm3, %v3832_v37, 0.0 }
 0x2fa   : > { %v3836_v22 = vpop.eup %3001  ;;  %1777 = vadd.xlane.f32.xlu0 %v1776_v36 }
 0x2fb   : > { %v1751_v44 = vpop.xlane.xlu1 %1750  ;;  %3005 = vpow2.f32 %v1762_v43  ;;  %v1782_v35 = vsel %vm1575_vm3, %v3836_v22, 0.0  ;;  %v3840_v48 = vpop.eup %3003 }
 0x2fc   : > { %1783 = vadd.xlane.f32.xlu2 %v1782_v35  ;;  %v1785_v52 = vsel %vm1575_vm3, %v3840_v48, 0.0  ;;  %v1759_v13 = vsub.f32 %v3817_v14, %v1751_v44 }
 0x2fd   : > { %v1742_v46 = vpop.xlane.xlu0 %1741 }
 0x2fe   : > { %v1756_v47 = vsub.f32 %v1668_v6, %v1742_v46  ;;  %v1774_v16 = vmul.f32 1.442695, %v1759_v13 }
 0x300   : > { %v1768_v49 = vmul.f32 1.442695, %v1756_v47 }
 0x301   : > { %v3842_v50 = vpop.eup %3005 }
 0x302   : > { %3007 = vpow2.f32 %v1768_v49  ;;  %v1779_v20 = vsel %vm1575_vm3, %v3842_v50, 0.0 }
 0x303   : > { %v1748_v51 = vpop.xlane.xlu1 %1747  ;;  %1780 = vadd.xlane.f32.xlu1 %v1779_v20 }
 0x304   : > { %v1758_v38 = vsub.f32 %v1706_v10, %v1748_v51  ;;  %1786 = vadd.xlane.f32.xlu2 %v1785_v52 }
 0x306   : > { %v1772_v54 = vmul.f32 1.442695, %v1758_v38  ;;  %v1745_v30 = vpop.xlane.xlu2 %1744 }
 0x307   : > { %v1757_v55 = vsub.f32 %v1687_v21, %v1745_v30 }
 0x308   : > { %3009 = vpow2.f32 %v1772_v54  ;;  %v3849_v53 = vpop.eup %3007 }
 0x309   : > { %v1770_v56 = vmul.f32 1.442695, %v1757_v55  ;;  %v1788_v57 = vsel %vm1575_vm3, %v3849_v53, 0.0 }
 0x30b   : > { %3011 = vpow2.f32 %v1770_v56 }
 0x30c   : > { %3013 = vpow2.f32 %v1774_v16  ;;  %1789 = vadd.xlane.f32.xlu2 %v1788_v57 }
 0x30e   : > { %v3853_v17 = vpop.eup %3009  ;;  %v2958_v58 = vpop.permute.xlu2 %2957 }
 0x30f   : > { %v1794_v28 = vsel %vm1575_vm3, %v3853_v17, 0.0  ;;  %v2960_v59 = vunpack.i.h.bf16 %v2958_v58  ;;  %v2959_v60 = vunpack.i.l.bf16 %v2958_v58 }
 0x310   : > { %1795 = vadd.xlane.f32.xlu1 %v1794_v28  ;;  %v2963_v61 = vpop.permute.xlu0 %2962 }
 0x311   : > { %v3857_v62 = vpop.eup %3011  ;;  %v1361_v63 = vrot.slane %v2960_v59, 4  ;;  %v1349_v0 = vrot.slane %v2959_v60, 4  ;;  %v2965_v1 = vunpack.i.h.bf16 %v2963_v61  ;;  %v2964_v2 = vunpack.i.l.bf16 %v2963_v61 }
 0x312   : > { %v3859_v7 = vpop.eup %3013  ;;  %v1791_v14 = vsel %vm1575_vm3, %v3857_v62, 0.0 }
 0x313   : > { %v1359_v15 = vrot.slane %v2965_v1, 4  ;;  %v1362_v3 = vsel %vm843_vm2, %v2965_v1, %v1361_v63  ;;  %v1347_v5 = vrot.slane %v2964_v2, 4  ;;  %v1350_v6 = vsel %vm843_vm2, %v2964_v2, %v1349_v0  ;;  %1792 = vadd.xlane.f32.xlu0 %v1791_v14 }
 0x314   : > { %v1370_v4 = vperm.slane %v1362_v3, %v3575_v27  ;;  %v1358_v8 = vperm.slane %v1350_v6, %v3575_v27  ;;  %v1797_v12 = vsel %vm1575_vm3, %v3859_v7, 0.0 }
 0x315   : > { %v1360_v10 = vsel %vm843_vm2, %v1359_v15, %v2960_v59  ;;  %v1348_v11 = vsel %vm843_vm2, %v1347_v5, %v2959_v60 }
 0x316   : > { %v1366_v18 = vperm.slane %v1360_v10, %v3575_v27  ;;  %v1383_v9 = vrot.slane %v1370_v4, 4  ;;  %v1354_v21 = vperm.slane %v1348_v11, %v3575_v27  ;;  %v1385_v23 = vrot.slane %v1358_v8, 4 }
 0x318   : > { %1798 = vadd.xlane.f32.xlu1 %v1797_v12  ;;  %v1371_v24 = vrot.slane %v1366_v18, 4  ;;  %v1373_v25 = vrot.slane %v1354_v21, 4  ;;  %v1384_v19 = vsel %vm843_vm2, %v1383_v9, %v1358_v8  ;;  %v1386_v26 = vsel %vm843_vm2, %v1370_v4, %v1385_v23  ;;  %v2973_v29 = vpop.permute.xlu0 %2972 }
 0x319   : > { %v1390_v31 = vperm.slane %v1384_v19, %v3599_v45  ;;  %v1394_v32 = vperm.slane %v1386_v26, %v3599_v45  ;;  %v2975_v33 = vunpack.i.h.bf16 %v2973_v29  ;;  %v2974_v34 = vunpack.i.l.bf16 %v2973_v29 }
 0x31a   : > { %v1372_v39 = vsel %vm843_vm2, %v1371_v24, %v1354_v21  ;;  %v1374_v40 = vsel %vm843_vm2, %v1366_v18, %v1373_v25 }
 0x31b   : > { %v2968_v41 = vpop.permute.xlu1 %2967  ;;  %v1378_v42 = vperm.slane %v1372_v39, %v3599_v45  ;;  %v1382_v43 = vperm.slane %v1374_v40, %v3599_v45  ;;  %v1399_v36 = vrot.slane %v1390_v31, 4  ;;  %v1401_v44 = vrot.slane %v1394_v32, 4 }
 0x31c   : > { %v1415_v35 = vrot.slane %v2975_v33, 4  ;;  %v1403_v46 = vrot.slane %v2974_v34, 4  ;;  %v2970_v47 = vunpack.i.h.bf16 %v2968_v41  ;;  %v2969_v49 = vunpack.i.l.bf16 %v2968_v41 }
 0x31d   : > { %v1395_v20 = vrot.slane %v1378_v42, 4  ;;  %v1397_v51 = vrot.slane %v1382_v43, 4  ;;  %v1400_v38 = vsel %vm843_vm2, 0.0, %v1399_v36  ;;  %v1402_v52 = vsel %vm843_vm2, 0.0, %v1401_v44 }
 0x31e   : > { %v1470_v13 = vsel %vm843_vm2, %v1401_v44, %v1390_v31  ;;  %v1475_v54 = vrot.slane %v1402_v52, 4  ;;  %v1417_v30 = vrot.slane %v2970_v47, 4  ;;  %v1404_v55 = vsel %vm843_vm2, %v1403_v46, %v2969_v49 }
 0x31f   : > { %v1396_v16 = vsel %vm843_vm2, 0.0, %v1395_v20  ;;  %v1398_v56 = vsel %vm843_vm2, 0.0, %v1397_v51  ;;  %v1474_v57 = vperm.slane %v1470_v13, %v3575_v27  ;;  %v1405_v58 = vrot.slane %v2969_v49, 4 }
 0x320   : > { %v1464_v28 = vrot.slane %v1398_v56, 4  ;;  %v1410_v59 = vperm.slane %v1404_v55, %v3575_v27  ;;  %v1416_v60 = vsel %vm843_vm2, %v1415_v35, %v2970_v47  ;;  %v1418_v61 = vsel %vm843_vm2, %v2975_v33, %v1417_v30 }
 0x321   : > { %v1406_v63 = vsel %vm843_vm2, %v2974_v34, %v1405_v58  ;;  %v1422_v0 = vperm.slane %v1416_v60, %v3575_v27  ;;  %v1426_v1 = vperm.slane %v1418_v61, %v3575_v27  ;;  %v1459_v2 = vsel %vm843_vm2, %v1397_v51, %v1378_v42 }
 0x322   : > { %v1414_v14 = vperm.slane %v1406_v63, %v3575_v27  ;;  %v1429_v15 = vrot.slane %v1410_v59, 4  ;;  %v1463_v3 = vperm.slane %v1459_v2, %v3575_v27  ;;  %v1465_v5 = vsel %vm843_vm2, %v1464_v28, %v1396_v16 }
 0x323   : > { %v1427_v6 = vrot.slane %v1422_v0, 4  ;;  %v1439_v4 = vrot.slane %v1426_v1, 4  ;;  %v1469_v8 = vperm.slane %v1465_v5, %v3575_v27  ;;  %v1476_v10 = vsel %vm843_vm2, %v1475_v54, %v1400_v38 }
 0x324   : > { %v1430_v11 = vsel %vm843_vm2, %v1422_v0, %v1429_v15  ;;  %v1441_v12 = vrot.slane %v1414_v14, 4  ;;  %v1480_v18 = vperm.slane %v1476_v10, %v3575_v27  ;;  %v1483_v9 = vrot.slane %v1463_v3, 4 }
 0x325   : > { %v1428_v21 = vsel %vm843_vm2, %v1427_v6, %v1410_v59  ;;  %v1438_v23 = vperm.slane %v1430_v11, %v3599_v45  ;;  %v1440_v24 = vsel %vm843_vm2, %v1439_v4, %v1414_v14  ;;  %v1495_v25 = vrot.slane %v1474_v57, 4 }
 0x326   : > { %v1434_v19 = vperm.slane %v1428_v21, %v3599_v45  ;;  %v1442_v26 = vsel %vm843_vm2, %v1426_v1, %v1441_v12  ;;  %v1446_v29 = vperm.slane %v1440_v24, %v3599_v45  ;;  %v1484_v31 = vsel %vm843_vm2, %v1469_v8, %v1483_v9 }
 0x327   : > { %v1450_v32 = vperm.slane %v1442_v26, %v3599_v45  ;;  %v1453_v33 = vrot.slane %v1438_v23, 4  ;;  %v1492_v34 = vperm.slane %v1484_v31, %v3599_v45  ;;  %v1496_v39 = vsel %vm843_vm2, %v1480_v18, %v1495_v25 }
 0x328   : > { %v1451_v40 = vrot.slane %v1434_v19, 4  ;;  %v1455_v41 = vrot.slane %v1446_v29, 4  ;;  %v1504_v42 = vperm.slane %v1496_v39, %v3599_v45  ;;  %v1481_v43 = vrot.slane %v1469_v8, 4 }
 0x329   : > { %v1454_v36 = vsel %vm843_vm2, 0.0, %v1453_v33  ;;  %v1457_v44 = vrot.slane %v1450_v32, 4  ;;  %v1513_v35 = vsel %vm843_vm2, %v1453_v33, %v1434_v19  ;;  %v1493_v46 = vrot.slane %v1480_v18, 4 }
 0x32a   : > { %v1452_v47 = vsel %vm843_vm2, 0.0, %v1451_v40  ;;  %v1456_v49 = vsel %vm843_vm2, 0.0, %v1455_v41  ;;  %v1517_v20 = vperm.slane %v1513_v35, %v3575_v27  ;;  %v1518_v51 = vrot.slane %v1454_v36, 4 }
 0x32b   : > { %v1458_v38 = vsel %vm843_vm2, 0.0, %v1457_v44  ;;  %v1509_v52 = vrot.slane %v1504_v42, 4  ;;  %v1482_v13 = vsel %vm843_vm2, %v1481_v43, %v1463_v3  ;;  %v1494_v54 = vsel %vm843_vm2, %v1493_v46, %v1474_v57 }
 0x32c   : > { %v1529_v30 = vrot.slane %v1458_v38, 4  ;;  %v1488_v55 = vperm.slane %v1482_v13, %v3599_v45  ;;  %v1500_v16 = vperm.slane %v1494_v54, %v3599_v45  ;;  %v1511_v56 = vrot.slane %v1492_v34, 4 }
 0x32d   : > { %v1510_v58 = vsel %vm843_vm2, %v1509_v52, %v1492_v34  ;;  %v1519_v28 = vsel %vm843_vm2, %v1518_v51, %v1452_v47  ;;  %v1524_v59 = vsel %vm843_vm2, %v1457_v44, %v1446_v29  ;;  %v1537_v60 = vrot.slane %v1517_v20, 4 }
 0x32e   : > { %v1569_v61 = vpack.c.bf16 %v1510_v58, %v1510_v58  ;;  %v1505_v63 = vrot.slane %v1500_v16, 4  ;;  %v1512_v0 = vsel %vm843_vm2, %v1504_v42, %v1511_v56  ;;  %v1507_v1 = vrot.slane %v1488_v55, 4 }
 0x32f   : > { %v1570_v2 = vpack.c.bf16 %v1512_v0, %v1512_v0  ;;  %v1523_v57 = vperm.slane %v1519_v28, %v3575_v27  ;;  %v1528_v14 = vperm.slane %v1524_v59, %v3575_v27  ;;  %v1530_v15 = vsel %vm843_vm2, %v1529_v30, %v1456_v49 }
 0x330   : > { %v1867_v3 = vsel %vm1827_vm4, %v1569_v61, 0  ;;  %v1506_v5 = vsel %vm843_vm2, %v1505_v63, %v1488_v55  ;;  %v1508_v6 = vsel %vm843_vm2, %v1500_v16, %v1507_v1  ;;  %v1534_v4 = vperm.slane %v1530_v15, %v3575_v27 }
 0x331   : > { %1876 = vmatpush.bf16.msra.mxu3 %v1867_v3  ;;  %v1567_v8 = vpack.c.bf16 %v1506_v5, %v1506_v5  ;;  %v1886_v10 = vsel %vm1827_vm4, %v1570_v2, 0  ;;  %v1568_v11 = vpack.c.bf16 %v1508_v6, %v1508_v6  ;;  %v1538_v12 = vsel %vm843_vm2, %v1523_v57, %v1537_v60 }
 0x332   : > { %1895 = vmatpush.bf16.msrb.mxu0 %v1886_v10  ;;  %v1546_v18 = vperm.slane %v1538_v12, %v3599_v45  ;;  %v1549_v9 = vrot.slane %v1528_v14, 4  ;;  %v1535_v21 = vrot.slane %v1523_v57, 4  ;;  %v1547_v23 = vrot.slane %v1534_v4, 4 }
 0x333   : > { %v1829_v24 = vsel %vm1827_vm4, %v1567_v8, 0  ;;  %v1848_v25 = vsel %vm1827_vm4, %v1568_v11, 0 }
 0x334   : > { %1838 = vmatpush.bf16.msra.mxu1 %v1829_v24  ;;  %1857 = vmatpush.bf16.msra.mxu2 %v1848_v25  ;;  %v1550_v19 = vsel %vm843_vm2, %v1534_v4, %v1549_v9  ;;  %v1565_v26 = vrot.slane %v1546_v18, 4  ;;  %v1536_v29 = vsel %vm843_vm2, %v1535_v21, %v1517_v20  ;;  %v1548_v31 = vsel %vm843_vm2, %v1547_v23, %v1528_v14 }
 0x335   : > { %v1558_v32 = vperm.slane %v1550_v19, %v3599_v45  ;;  %v1542_v33 = vperm.slane %v1536_v29, %v3599_v45  ;;  %v1554_v34 = vperm.slane %v1548_v31, %v3599_v45 }
 0x337   : > { %v1566_v39 = vsel %vm843_vm2, %v1558_v32, %v1565_v26  ;;  %v1561_v40 = vrot.slane %v1542_v33, 4  ;;  %v1563_v41 = vrot.slane %v1558_v32, 4  ;;  %v1559_v42 = vrot.slane %v1554_v34, 4 }
 0x338   : > { %v1574_v43 = vpack.c.bf16 %v1566_v39, %v1566_v39 }
 0x339   : > { %v1562_v36 = vsel %vm843_vm2, %v1554_v34, %v1561_v40  ;;  %v1564_v44 = vsel %vm843_vm2, %v1563_v41, %v1546_v18  ;;  %v1560_v35 = vsel %vm843_vm2, %v1559_v42, %v1542_v33 }
 0x33a   : > { %v1962_v46 = vsel %vm1827_vm4, %v1574_v43, 0  ;;  %v1572_v47 = vpack.c.bf16 %v1562_v36, %v1562_v36  ;;  %v1573_v49 = vpack.c.bf16 %v1564_v44, %v1564_v44  ;;  %v1571_v20 = vpack.c.bf16 %v1560_v35, %v1560_v35 }
 0x33b   : > { %1971 = vmatpush.bf16.msra.mxu0 %v1962_v46 }
 0x33c   : > { %v1924_v51 = vsel %vm1827_vm4, %v1572_v47, 0  ;;  %v1943_v38 = vsel %vm1827_vm4, %v1573_v49, 0  ;;  %v1905_v52 = vsel %vm1827_vm4, %v1571_v20, 0 }
 0x33d   : > { %1933 = vmatpush.bf16.msrb.mxu2 %v1924_v51  ;;  %1952 = vmatpush.bf16.msrb.mxu3 %v1943_v38 }
 0x33e   : > { %1914 = vmatpush.bf16.msrb.mxu1 %v1905_v52 }
 0x36d   : > { %v1778_v13 = vpop.xlane.xlu0 %1777 }
 0x36e   : > { %3015 = vrcp.f32 %v1778_v13 }
 0x36f   : > { %v1784_v54 = vpop.xlane.xlu2 %1783 }
 0x370   : > { %3017 = vrcp.f32 %v1784_v54 }
 0x374   : > { %v3016_v30 = vpop.eup %3015 }
 0x375   : > { %v1808_v55 = vmul.f32 %v3016_v30, %v3832_v37 }
 0x376   : > { %v3018_v16 = vpop.eup %3017  ;;  %v1781_v56 = vpop.xlane.xlu1 %1780 }
 0x377   : > { %v1816_v58 = vpack.c.bf16 %v1808_v55, %v1808_v55  ;;  %v1810_v28 = vmul.f32 %v3018_v16, %v3836_v22  ;;  %3019 = vrcp.f32 %v1781_v56  ;;  %v1787_v59 = vpop.xlane.xlu2 %1786 }
 0x378   : > { %3021 = vrcp.f32 %v1787_v59 }
 0x379   : > { %v1818_v60 = vpack.c.bf16 %v1810_v28, %v1810_v28  ;;  %2762 = vmatmul.msk.bf16.vlgmr.msra.gmra.mxu1 %vm1575_vm3, %v1816_v58 }
 0x37b   : > { %2764 = vmatmul.msk.bf16.vlgmr.msra.gmra.mxu3 %vm1575_vm3, %v1818_v60 }
 0x37d   : > { %v3020_v61 = vpop.eup %3019 }
 0x37e   : > { %v3022_v63 = vpop.eup %3021  ;;  %v1809_v0 = vmul.f32 %v3020_v61, %v3842_v50 }
 0x37f   : > { %v1811_v1 = vmul.f32 %v3022_v63, %v3840_v48  ;;  %v1790_v37 = vpop.xlane.xlu2 %1789 }
 0x380   : > { %v1817_v2 = vpack.c.bf16 %v1809_v0, %v1809_v0  ;;  %3023 = vrcp.f32 %v1790_v37 }
 0x381   : > { %v1819_v57 = vpack.c.bf16 %v1811_v1, %v1811_v1 }
 0x382   : > { %2763 = vmatmul.msk.bf16.vlgmr.msra.gmra.mxu2 %vm1575_vm3, %v1817_v2 }
 0x383   : > { %v1796_v22 = vpop.xlane.xlu1 %1795  ;;  %2765 = vmatmul.msk.bf16.vlgmr.msrb.gmra.mxu0 %vm1575_vm3, %v1819_v57 }
 0x384   : > { %3025 = vrcp.f32 %v1796_v22 }
 0x386   : > { %v3024_v14 = vpop.eup %3023  ;;  %v1793_v15 = vpop.xlane.xlu0 %1792 }
 0x387   : > { %v1812_v3 = vmul.f32 %v3024_v14, %v3849_v53  ;;  %3027 = vrcp.f32 %v1793_v15 }
 0x389   : > { %v1820_v6 = vpack.c.bf16 %v1812_v3, %v1812_v3 }
 0x38a   : > { %v3026_v5 = vpop.eup %3025 }
 0x38b   : > { %v1814_v50 = vmul.f32 %v3026_v5, %v3853_v17  ;;  %v1799_v48 = vpop.xlane.xlu1 %1798  ;;  %2766 = vmatmul.msk.bf16.vlgmr.msrb.gmra.mxu1 %vm1575_vm3, %v1820_v6 }
 0x38c   : > { %3029 = vrcp.f32 %v1799_v48 }
 0x38d   : > { %v1822_v4 = vpack.c.bf16 %v1814_v50, %v1814_v50  ;;  %v3028_v8 = vpop.eup %3027 }
 0x38e   : > { %v1813_v10 = vmul.f32 %v3028_v8, %v3857_v62 }
 0x38f   : > { %2768 = vmatmul.msk.bf16.vlgmr.msrb.gmra.mxu3 %vm1575_vm3, %v1822_v4 }
 0x390   : > { %v1821_v11 = vpack.c.bf16 %v1813_v10, %v1813_v10 }
 0x392   : > { %v3030_v12 = vpop.eup %3029  ;;  %2767 = vmatmul.msk.bf16.vlgmr.msrb.gmra.mxu2 %vm1575_vm3, %v1821_v11 }
 0x393   : > { %v1815_v18 = vmul.f32 %v3030_v12, %v3859_v7 }
 0x395   : > { %v1823_v53 = vpack.c.bf16 %v1815_v18, %v1815_v18 }
 0x397   : > { %2769 = vmatmul.msk.bf16.vlgmr.msra.gmra.mxu0 %vm1575_vm3, %v1823_v53 }
 0x3f6   : > { %v1840_v17 = vpop.f32.mrf.mxu1 }
 0x3f7   : > { %v1979_v24 = vrot.slane %v1840_v17, 4 }
 0x3fe   : > { %v1842_v9 = vpop.f32.mrf.mxu1  ;;  %v1878_v21 = vpop.f32.mrf.mxu3 }
 0x3ff   : > { %v1977_v23 = vrot.slane %v1878_v21, 4  ;;  %v1980_v62 = vsel %vm843_vm2, %v1878_v21, %v1979_v24 }
 0x400   : > { %v1897_v25 = vpop.f32.mrf.mxu0  ;;  %v1988_v7 = vperm.slane %v1980_v62, %v3575_v27 }
 0x401   : > { %v1978_v19 = vsel %vm843_vm2, %v1977_v23, %v1840_v17  ;;  %v1989_v29 = vrot.slane %v1897_v25, 4 }
 0x402   : > { %v1984_v26 = vperm.slane %v1978_v19, %v3575_v27  ;;  %v2015_v36 = vrot.slane %v1988_v7, 4 }
 0x404   : > { %v2003_v31 = vrot.slane %v1984_v26, 4 }
 0x405   : > { %v1859_v32 = vpop.f32.mrf.mxu2 }
 0x406   : > { %v1990_v33 = vsel %vm843_vm2, %v1989_v29, %v1859_v32  ;;  %v1991_v34 = vrot.slane %v1859_v32, 4  ;;  %v1880_v39 = vpop.f32.mrf.mxu3 }
 0x407   : > { %v1996_v40 = vperm.slane %v1990_v33, %v3575_v27 }
 0x408   : > { %v1992_v41 = vsel %vm843_vm2, %v1897_v25, %v1991_v34  ;;  %v1899_v42 = vpop.f32.mrf.mxu0  ;;  %v1916_v43 = vpop.f32.mrf.mxu1 }
 0x409   : > { %v2000_v44 = vperm.slane %v1992_v41, %v3575_v27  ;;  %v2001_v35 = vrot.slane %v1996_v40, 4  ;;  %v2004_v46 = vsel %vm843_vm2, %v1996_v40, %v2003_v31  ;;  %v2035_v0 = vrot.slane %v1916_v43, 4 }
 0x40a   : > { %v2012_v47 = vperm.slane %v2004_v46, %v3599_v45 }
 0x40b   : > { %v2002_v49 = vsel %vm843_vm2, %v2001_v35, %v1984_v26  ;;  %v2013_v20 = vrot.slane %v2000_v44, 4  ;;  %v2016_v51 = vsel %vm843_vm2, %v2000_v44, %v2015_v36 }
 0x40c   : > { %v2008_v38 = vperm.slane %v2002_v49, %v3599_v45  ;;  %v2024_v52 = vperm.slane %v2016_v51, %v3599_v45  ;;  %v2027_v13 = vrot.slane %v2012_v47, 4 }
 0x40d   : > { %v2014_v54 = vsel %vm843_vm2, %v2013_v20, %v1988_v7  ;;  %v1861_v30 = vpop.f32.mrf.mxu2 }
 0x40e   : > { %v2020_v55 = vperm.slane %v2014_v54, %v3599_v45  ;;  %v2025_v16 = vrot.slane %v2008_v38, 4  ;;  %v2028_v56 = vsel %vm843_vm2, 0.0, %v2027_v13  ;;  %v2031_v58 = vrot.slane %v2024_v52, 4 }
 0x40f   : > { %v2089_v28 = vsel %vm843_vm2, %v2027_v13, %v2008_v38  ;;  %v2094_v59 = vrot.slane %v2028_v56, 4 }
 0x410   : > { %v2026_v60 = vsel %vm843_vm2, 0.0, %v2025_v16  ;;  %v2029_v61 = vrot.slane %v2020_v55, 4  ;;  %v2032_v63 = vsel %vm843_vm2, 0.0, %v2031_v58  ;;  %v1918_v1 = vpop.f32.mrf.mxu1  ;;  %v2093_v37 = vperm.slane %v2089_v28, %v3575_v27 }
 0x411   : > { %v2095_v2 = vsel %vm843_vm2, %v2094_v59, %v2026_v60  ;;  %v2100_v57 = vsel %vm843_vm2, %v2031_v58, %v2020_v55  ;;  %v2105_v22 = vrot.slane %v2032_v63, 4 }
 0x412   : > { %v1954_v14 = vpop.f32.mrf.mxu3  ;;  %v2030_v15 = vsel %vm843_vm2, 0.0, %v2029_v61  ;;  %v2104_v3 = vperm.slane %v2100_v57, %v3575_v27  ;;  %v2099_v4 = vperm.slane %v2095_v2, %v3575_v27  ;;  %v2113_v21 = vrot.slane %v2093_v37, 4 }
 0x413   : > { %v2033_v5 = vrot.slane %v1954_v14, 4  ;;  %v2036_v6 = vsel %vm843_vm2, %v1954_v14, %v2035_v0  ;;  %v2106_v8 = vsel %vm843_vm2, %v2105_v22, %v2030_v15 }
 0x414   : > { %v2044_v50 = vperm.slane %v2036_v6, %v3575_v27  ;;  %v1973_v48 = vpop.f32.mrf.mxu0  ;;  %v2110_v12 = vperm.slane %v2106_v8, %v3575_v27  ;;  %v2125_v23 = vrot.slane %v2104_v3, 4  ;;  %v2111_v62 = vrot.slane %v2099_v4, 4 }
 0x415   : > { %v2034_v10 = vsel %vm843_vm2, %v2033_v5, %v1916_v43  ;;  %v2045_v11 = vrot.slane %v1973_v48, 4  ;;  %v1935_v18 = vpop.f32.mrf.mxu2  ;;  %v2114_v39 = vsel %vm843_vm2, %v2099_v4, %v2113_v21 }
 0x416   : > { %v2040_v53 = vperm.slane %v2034_v10, %v3575_v27  ;;  %v2047_v17 = vrot.slane %v1935_v18, 4  ;;  %v2071_v25 = vrot.slane %v2044_v50, 4  ;;  %v2123_v29 = vrot.slane %v2110_v12, 4 }
 0x417   : > { %v2046_v9 = vsel %vm843_vm2, %v2045_v11, %v1935_v18  ;;  %v2126_v40 = vsel %vm843_vm2, %v2110_v12, %v2125_v23  ;;  %v2112_v35 = vsel %vm843_vm2, %v2111_v62, %v2093_v37  ;;  %v2122_v52 = vperm.slane %v2114_v39, %v3599_v45 }
 0x418   : > { %v2059_v24 = vrot.slane %v2040_v53, 4  ;;  %v2052_v19 = vperm.slane %v2046_v9, %v3575_v27  ;;  %v2048_v26 = vsel %vm843_vm2, %v1973_v48, %v2047_v17  ;;  %v2124_v41 = vsel %vm843_vm2, %v2123_v29, %v2104_v3 }
 0x419   : > { %v2056_v7 = vperm.slane %v2048_v26, %v3575_v27  ;;  %v2130_v20 = vperm.slane %v2124_v41, %v3599_v45  ;;  %v2134_v13 = vperm.slane %v2126_v40, %v3599_v45  ;;  %v2118_v28 = vperm.slane %v2112_v35, %v3599_v45  ;;  %v2817_v41 = vld [vmem:[%s3521_s9 + $0x8] sm:$0xff] }
 0x41a   : > { %v2057_v31 = vrot.slane %v2052_v19, 4  ;;  %v2060_v32 = vsel %vm843_vm2, %v2052_v19, %v2059_v24  ;;  %v1956_v33 = vpop.f32.mrf.mxu3  ;;  %v2141_v10 = vrot.slane %v2122_v52, 4  ;;  %2259 = vmatpush.bf16.msra.mxu1 %v2817_v41 }
 0x41b   : > { %v2068_v34 = vperm.slane %v2060_v32, %v3599_v45  ;;  %v2069_v43 = vrot.slane %v2056_v7, 4  ;;  %v2072_v36 = vsel %vm843_vm2, %v2056_v7, %v2071_v25  ;;  %v2135_v59 = vrot.slane %v2130_v20, 4 }
 0x41c   : > { %v2058_v42 = vsel %vm843_vm2, %v2057_v31, %v2040_v53  ;;  %v1975_v44 = vpop.f32.mrf.mxu0  ;;  %v2080_v47 = vperm.slane %v2072_v36, %v3599_v45  ;;  %v2139_v4 = vrot.slane %v2134_v13, 4  ;;  %v2137_v11 = vrot.slane %v2118_v28, 4 }
 0x41d   : > { %v2064_v46 = vperm.slane %v2058_v42, %v3599_v45  ;;  %v2083_v49 = vrot.slane %v2068_v34, 4  ;;  %v2070_v51 = vsel %vm843_vm2, %v2069_v43, %v2044_v50  ;;  %v1937_v38 = vpop.f32.mrf.mxu2  ;;  %v2136_v15 = vsel %vm843_vm2, %v2135_v59, %v2118_v28  ;;  %v2816_v42 = vld [vmem:[%s3521_s9] sm:$0xff] }
 0x41e   : > { %v2076_v54 = vperm.slane %v2070_v51, %v3599_v45  ;;  %v2087_v16 = vrot.slane %v2080_v47, 4  ;;  %v2140_v62 = vsel %vm843_vm2, %v2139_v4, %v2122_v52  ;;  %v2142_v26 = vsel %vm843_vm2, %v2134_v13, %v2141_v10  ;;  %2260 = vmatpush.bf16.msra.mxu1 %v2816_v42  ;;  %v3041_v59 = vld [vmem:[#allocation2] sm:$0xff] }
 0x41f   : > { %v2081_v30 = vrot.slane %v2064_v46, 4  ;;  %v2084_v55 = vsel %vm843_vm2, 0.0, %v2083_v49  ;;  %v2143_v56 = vsel %vm843_vm2, %v2083_v49, %v2064_v46  ;;  %v2138_v7 = vsel %vm843_vm2, %v2130_v20, %v2137_v11 }
 0x420   : > { %v2148_v58 = vrot.slane %v2084_v55, 4  ;;  %v2085_v60 = vrot.slane %v2076_v54, 4  ;;  %v2088_v61 = vsel %vm843_vm2, 0.0, %v2087_v16  ;;  %v2154_v63 = vsel %vm843_vm2, %v2087_v16, %v2076_v54 }
 0x421   : > { %v2082_v0 = vsel %vm843_vm2, 0.0, %v2081_v30  ;;  %v2158_v1 = vperm.slane %v2154_v63, %v3575_v27  ;;  %v2159_v37 = vrot.slane %v2088_v61, 4  ;;  %v2147_v2 = vperm.slane %v2143_v56, %v3575_v27  ;;  %v2992_v56 = vld [vmem:[%s4199_s12] ss:$0 sm:$0xff] }
 0x422   : > { %v2149_v57 = vsel %vm843_vm2, %v2148_v58, %v2082_v0  ;;  %v2086_v22 = vsel %vm843_vm2, 0.0, %v2085_v60 }
 0x423   : > { %v2153_v14 = vperm.slane %v2149_v57, %v3575_v27  ;;  %v2160_v3 = vsel %vm843_vm2, %v2159_v37, %v2086_v22  ;;  %v2179_v5 = vrot.slane %v2158_v1, 4  ;;  %v2167_v6 = vrot.slane %v2147_v2, 4 }
 0x424   : > { %v2164_v50 = vperm.slane %v2160_v3, %v3575_v27  ;;  %v3300_v3 = vmov 32.0  }
 0x425   : > { %v2165_v48 = vrot.slane %v2153_v14, 4  ;;  %v2168_v8 = vsel %vm843_vm2, %v2153_v14, %v2167_v6  ;;  %3031 = vrcp.f32 %v3300_v3 }
 0x426   : > { %v2176_v12 = vperm.slane %v2168_v8, %v3599_v45  ;;  %v2180_v18 = vsel %vm843_vm2, %v2164_v50, %v2179_v5  ;;  %v2177_v17 = vrot.slane %v2164_v50, 4 }
 0x427   : > { %v2166_v53 = vsel %vm843_vm2, %v2165_v48, %v2147_v2  ;;  %v2188_v9 = vperm.slane %v2180_v18, %v3599_v45  ;;  %v3042_v2 = vld [vmem:[#allocation2 + $0x8] sm:$0xff] }
 0x428   : > { %v2172_v21 = vperm.slane %v2166_v53, %v3599_v45  ;;  %v2195_v23 = vrot.slane %v2176_v12, 4  ;;  %v2178_v27 = vsel %vm843_vm2, %v2177_v17, %v2158_v1 }
 0x429   : > { %v2193_v24 = vrot.slane %v2188_v9, 4  ;;  %v2184_v25 = vperm.slane %v2178_v27, %v3599_v45 }
 0x42a   : > { %v2191_v19 = vrot.slane %v2172_v21, 4  ;;  %v2196_v29 = vsel %vm843_vm2, %v2188_v9, %v2195_v23  ;;  %v2819_v9 = vld [vmem:[%s3534_s16 + $0x8] sm:$0xff]  ;;  %v2818_v23 = vld [vmem:[%s3534_s16] sm:$0xff] }
 0x42b   : > { %v2194_v31 = vsel %vm843_vm2, %v2193_v24, %v2176_v12  ;;  %v2986_v32 = vpack.i.bf16 %v2196_v29, %v2142_v26  ;;  %v2189_v33 = vrot.slane %v2184_v25, 4  ;;  %v3032_v5 = vpop.eup %3031  ;;  %2366 = vmatpush.bf16.msra.mxu2 %v2819_v9 }
 0x42c   : > { %v2192_v34 = vsel %vm843_vm2, %v2184_v25, %v2191_v19  ;;  %v2981_v39 = vpack.i.bf16 %v2194_v31, %v2140_v62  ;;  %v2278_v6 = vmul.f32 32.0, %v3032_v5  ;;  %vm2282_vm7 = vweird.f32 %v3032_v5 }
 0x42d   : > { %v2976_v40 = vpack.i.bf16 %v2192_v34, %v2138_v7  ;;  %2987 = vrot.lane.b32.xlu1 %v2986_v32, %s3297_s25  ;;  %v2190_v45 = vsel %vm843_vm2, %v2189_v33, %v2172_v21 }
 0x42e   : > { %2982 = vrot.lane.b32.xlu2 %v2981_v39, %s3298_s30  ;;  %v2279_v50 = vsub.f32 1.0, %v2278_v6 }
 0x42f   : > { %2977 = vrot.lane.b32.xlu0 %v2976_v40, %s3299_s27  ;;  %2367 = vmatpush.bf16.msra.mxu2 %v2818_v23 }
 0x430   : > { %v2280_v48 = vmul.f32 %v3032_v5, %v2279_v50 }
 0x432   : > { %v2281_v4 = vadd.f32 %v3032_v5, %v2280_v48 }
 0x434   : > { %v4068_v8 = vsel %vm2282_vm7, %v3032_v5, %v2281_v4 }
 0x488   : > { %v2983_v43 = vpop.permute.xlu2 %2982 }
 0x489   : > { %v2985_v47 = vunpack.i.h.bf16 %v2983_v43  ;;  %v2984_v49 = vunpack.i.l.bf16 %v2983_v43 }
 0x49f   : > { %v2988_v36 = vpop.permute.xlu1 %2987 }
 0x4a0   : > { %v2990_v20 = vunpack.i.h.bf16 %v2988_v36  ;;  %v2989_v51 = vunpack.i.l.bf16 %v2988_v36 }
 0x4a1   : > { %v2978_v44 = vpop.permute.xlu0 %2977 }
 0x4a2   : > { %v2980_v35 = vunpack.i.h.bf16 %v2978_v44  ;;  %v2979_v46 = vunpack.i.l.bf16 %v2978_v44 }
 0x4a4   : > { %v2221_v38 = vsel %vm1575_vm3, %v2136_v15, %v2979_v46  ;;  %v2222_v52 = vsel %vm1575_vm3, %v2190_v45, %v2980_v35  ;;  %v2993_v35 = vld [vmem:[%s3500_s15] ss:$0 sm:$0xff] }
 0x4a5   : > { %v2224_v13 = vsel %vm2223_vm5, %v2221_v38, %v2984_v49  ;;  %v2225_v54 = vsel %vm2223_vm5, %v2222_v52, %v2985_v47  ;;  %v2994_v52 = vld [vmem:[%s744_s8] ss:$0 sm:$0xff] }
 0x4a6   : > { %v2227_v30 = vsel %vm2226_vm6, %v2224_v13, %v2989_v51  ;;  %v2228_v55 = vsel %vm2226_vm6, %v2225_v54, %v2990_v20 }
 0x4a7   : > { %v2229_v16 = vpack.c.bf16 %v2228_v55, %v2227_v30 }
 0x4a9   : > { %2778 = vmatmul.msk.bf16.vlgmr.msra.gmra.mxu1 %vm804_vm1, %v2229_v16  ;;  %v2823_v16 = vld [vmem:[%s3548_s23 + $0x18] sm:$0xff] }
 0x4aa   : > { %2421 = vmatpush.bf16.msra.mxu3 %v2823_v16 }
 0x526   : > { %v2262_v58 = vpop.f32.mrf.mxu1 }
 0x527   : > { %v2263_v28 = vadd.f32 %v2992_v56, %v2262_v58  ;;  %v2821_v58 = vld [vmem:[%s3548_s23 + $0x8] sm:$0xff] }
 0x529   : > { %v4059_v60 = vadd.f32 %v3041_v59, %v2263_v28  ;;  %v2820_v28 = vld [vmem:[%s3548_s23] sm:$0xff] }
 0x52b   : > { %v2271_v61 = vsel %vm804_vm1, %v4059_v60, 0.0  ;;  %v2286_v63 = vmul.f32 %v4059_v60, %v4059_v60 }
 0x52c   : > { %2272 = vadd.xlane.f32.xlu0 %v2271_v61 }
 0x52d   : > { %v2288_v0 = vsel %vm804_vm1, %v2286_v63, 0.0 }
 0x52e   : > { %v2264_v1 = vpop.f32.mrf.mxu1  ;;  %2289 = vadd.xlane.f32.xlu1 %v2288_v0 }
 0x52f   : > { %v2265_v37 = vadd.f32 %v2992_v56, %v2264_v1  ;;  %v2822_v56 = vld [vmem:[%s3548_s23 + $0x10] sm:$0xff] }
 0x530   : > { %2422 = vmatpush.bf16.msra.mxu3 %v2822_v56 }
 0x531   : > { %v2268_v57 = vadd.f32 %v3042_v2, %v2265_v37 }
 0x533   : > { %v2274_v22 = vsel %vm804_vm1, %v2268_v57, 0.0  ;;  %v2287_v14 = vmul.f32 %v2268_v57, %v2268_v57 }
 0x534   : > { %2275 = vadd.xlane.f32.xlu2 %v2274_v22  ;;  %2423 = vmatpush.bf16.msra.mxu3 %v2821_v58 }
 0x535   : > { %v2291_v15 = vsel %vm804_vm1, %v2287_v14, 0.0 }
 0x536   : > { %2292 = vadd.xlane.f32.xlu0 %v2291_v15 }
 0x538   : > { %2424 = vmatpush.bf16.msra.mxu3 %v2820_v28 }
 0x59f   : > { %v2273_v10 = vpop.xlane.xlu0 %2272 }
 0x5a0   : > { %v2284_v11 = vmul.f32 %v4068_v8, %v2273_v10 }
 0x5a1   : > { %v2290_v12 = vpop.xlane.xlu1 %2289 }
 0x5a2   : > { %v2296_v18 = vmul.f32 %v2284_v11, %v2284_v11  ;;  %v2294_v53 = vmul.f32 %v2290_v12, %v4068_v8  ;;  %v2300_v36 = vsub.f32 %v4059_v60, %v2284_v11  ;;  %v2995_v60 = vld [vmem:[%s752_s13] ss:$0 sm:$0xff] }
 0x5a4   : > { %v2298_v17 = vsub.f32 %v2294_v53, %v2296_v18 }
 0x5a6   : > { %v2302_v21 = vadd.f32 1e-05, %v2298_v17 }
 0x5a7   : > { %v2276_v27 = vpop.xlane.xlu2 %2275 }
 0x5a8   : > { %3033 = vrsqrt.f32 %v2302_v21  ;;  %v2285_v24 = vmul.f32 %v4068_v8, %v2276_v27  ;;  %vm2310_vm9 = vweird.f32 %v2302_v21 }
 0x5a9   : > { %v2293_v25 = vpop.xlane.xlu0 %2292 }
 0x5aa   : > { %v2297_v19 = vmul.f32 %v2285_v24, %v2285_v24  ;;  %v2295_v62 = vmul.f32 %v2293_v25, %v4068_v8  ;;  %v2301_v49 = vsub.f32 %v2268_v57, %v2285_v24  ;;  %v2996_v57 = vld [vmem:[%s760_s19] ss:$0 sm:$0xff] }
 0x5ac   : > { %v2299_v26 = vsub.f32 %v2295_v62, %v2297_v19 }
 0x5ae   : > { %v3034_v29 = vpop.eup %3033  ;;  %v2303_v7 = vadd.f32 1e-05, %v2299_v26 }
 0x5af   : > { %v2305_v31 = vmul.f32 %v3034_v29, %v2302_v21  ;;  %vm2311_vm8 = vweird.f32 %v3034_v29 }
 0x5b0   : > { %3035 = vrsqrt.f32 %v2303_v7  ;;  %vm2312_vm10 = vmor %vm2310_vm9, %vm2311_vm8  ;;  %vm2320_vm12 = vweird.f32 %v2303_v7 }
 0x5b1   : > { %v2306_v32 = vmul.f32 %v3034_v29, %v2305_v31 }
 0x5b3   : > { %v2307_v33 = vmul.f32 0.5, %v2306_v32 }
 0x5b5   : > { %v2308_v34 = vsub.f32 1.5, %v2307_v33 }
 0x5b6   : > { %v3036_v39 = vpop.eup %3035 }
 0x5b7   : > { %v2309_v40 = vmul.f32 %v3034_v29, %v2308_v34  ;;  %v2315_v45 = vmul.f32 %v3036_v39, %v2303_v7  ;;  %vm2321_vm11 = vweird.f32 %v3036_v39 }
 0x5b8   : > { %vm2322_vm13 = vmor %vm2320_vm12, %vm2321_vm11 }
 0x5b9   : > { %v2316_v41 = vmul.f32 %v3036_v39, %v2315_v45  ;;  %v2313_v42 = vsel %vm2312_vm10, %v3034_v29, %v2309_v40 }
 0x5ba   : > { %v2324_v46 = vmul.f32 %v2313_v42, %v2300_v36 }
 0x5bb   : > { %v2317_v43 = vmul.f32 0.5, %v2316_v41 }
 0x5bc   : > { %v2329_v51 = vmul.f32 %v2993_v35, %v2324_v46 }
 0x5bd   : > { %v2318_v44 = vsub.f32 1.5, %v2317_v43  ;;  %v2997_v43 = vld [vmem:[%s3554_s29] ss:$0 sm:$0xff] }
 0x5be   : > { %v2334_v54 = vadd.f32 %v2994_v52, %v2329_v51 }
 0x5bf   : > { %v2319_v47 = vmul.f32 %v3036_v39, %v2318_v44 }
 0x5c1   : > { %v2323_v20 = vsel %vm2322_vm13, %v3036_v39, %v2319_v47 }
 0x5c2   : > { %v2325_v38 = vmul.f32 %v2323_v20, %v2301_v49 }
 0x5c4   : > { %v2330_v13 = vmul.f32 %v2993_v35, %v2325_v38 }
 0x5c6   : > { %v2335_v30 = vadd.f32 %v2994_v52, %v2330_v13 }
 0x5c8   : > { %v2336_v55 = vpack.c.bf16 %v2335_v30, %v2334_v54 }
 0x5ca   : > { %2787 = vmatmul.msk.bf16.vlgmr.msra.gmra.mxu2 %vm804_vm1, %v2336_v55 }
 0x64d   : > { %v2369_v59 = vpop.f32.mrf.mxu2 }
 0x64e   : > { %v2370_v61 = vadd.f32 %v2995_v60, %v2369_v59 }
 0x650   : > { %v2374_v1 = vmax.f32 %v2370_v61, 0.0 }
 0x655   : > { %v2371_v63 = vpop.f32.mrf.mxu2 }
 0x656   : > { %v2372_v0 = vadd.f32 %v2995_v60, %v2371_v63 }
 0x658   : > { %v2375_v37 = vmax.f32 %v2372_v0, 0.0 }
 0x65a   : > { %v2376_v2 = vpack.c.bf16 %v2375_v37, %v2374_v1 }
 0x65c   : > { %2804 = vmatmul.msk.bf16.vlgmr.msra.gmra.mxu3 %vm2413_vm14, %v2376_v2 }
 0x6df   : > { %v2426_v22 = vpop.f32.mrf.mxu3 }
 0x6e0   : > { %v2427_v14 = vadd.f32 %v2996_v57, %v2426_v22 }
 0x6e2   : > { %v2431_v15 = vadd.f32 %v2427_v14, %v2334_v54 }
 0x6e4   : > { %v2435_v3 = vsel %vm804_vm1, %v2431_v15, 0.0  ;;  %v2443_v5 = vmul.f32 %v2431_v15, %v2431_v15 }
 0x6e5   : > { %2436 = vadd.xlane.f32.xlu2 %v2435_v3 }
 0x6e6   : > { %v2445_v6 = vsel %vm804_vm1, %v2443_v5, 0.0 }
 0x6e7   : > { %v2428_v50 = vpop.f32.mrf.mxu3  ;;  %2446 = vadd.xlane.f32.xlu1 %v2445_v6 }
 0x6e8   : > { %v2429_v48 = vadd.f32 %v2996_v57, %v2428_v50 }
 0x6ea   : > { %v2432_v4 = vadd.f32 %v2429_v48, %v2335_v30 }
 0x6ec   : > { %v2438_v10 = vsel %vm804_vm1, %v2432_v4, 0.0  ;;  %v2444_v11 = vmul.f32 %v2432_v4, %v2432_v4 }
 0x6ed   : > { %2439 = vadd.xlane.f32.xlu0 %v2438_v10 }
 0x6ee   : > { %v2448_v12 = vsel %vm804_vm1, %v2444_v11, 0.0 }
 0x6ef   : > { %2449 = vadd.xlane.f32.xlu2 %v2448_v12 }
 0x758   : > { %v2437_v18 = vpop.xlane.xlu2 %2436 }
 0x759   : > { %v2441_v53 = vmul.f32 %v2437_v18, %v4068_v8 }
 0x75a   : > { %v2447_v17 = vpop.xlane.xlu1 %2446 }
 0x75b   : > { %v2453_v9 = vmul.f32 %v2441_v53, %v2441_v53  ;;  %v2451_v21 = vmul.f32 %v2447_v17, %v4068_v8  ;;  %v2457_v42 = vsub.f32 %v2431_v15, %v2441_v53 }
 0x75d   : > { %v2455_v23 = vsub.f32 %v2451_v21, %v2453_v9 }
 0x75f   : > { %v2459_v27 = vadd.f32 1e-05, %v2455_v23 }
 0x760   : > { %v2440_v24 = vpop.xlane.xlu0 %2439 }
 0x761   : > { %3037 = vrsqrt.f32 %v2459_v27  ;;  %v2442_v25 = vmul.f32 %v2440_v24, %v4068_v8  ;;  %vm2467_vm0 = vweird.f32 %v2459_v27 }
 0x762   : > { %v2450_v19 = vpop.xlane.xlu2 %2449 }
 0x763   : > { %v2454_v62 = vmul.f32 %v2442_v25, %v2442_v25  ;;  %v2452_v26 = vmul.f32 %v2450_v19, %v4068_v8  ;;  %v2998_v8 = vld [vmem:[%s763_s2] ss:$0 sm:$0xff]  ;;  %v2458_v38 = vsub.f32 %v2432_v4, %v2442_v25 }
 0x765   : > { %v2456_v29 = vsub.f32 %v2452_v26, %v2454_v62 }
 0x767   : > { %v3038_v7 = vpop.eup %3037  ;;  %v2460_v31 = vadd.f32 1e-05, %v2456_v29 }
 0x768   : > { %v2462_v32 = vmul.f32 %v3038_v7, %v2459_v27  ;;  %vm2468_vm15 = vweird.f32 %v3038_v7 }
 0x769   : > { %3039 = vrsqrt.f32 %v2460_v31  ;;  %vm2469_vm2 = vmor %vm2467_vm0, %vm2468_vm15  ;;  %vm2477_vm4 = vweird.f32 %v2460_v31 }
 0x76a   : > { %v2463_v33 = vmul.f32 %v3038_v7, %v2462_v32 }
 0x76c   : > { %v2464_v34 = vmul.f32 0.5, %v2463_v33 }
 0x76e   : > { %v2465_v39 = vsub.f32 1.5, %v2464_v34 }
 0x76f   : > { %v3040_v40 = vpop.eup %3039 }
 0x770   : > { %v2466_v45 = vmul.f32 %v3038_v7, %v2465_v39  ;;  %v2472_v41 = vmul.f32 %v3040_v40, %v2460_v31  ;;  %vm2478_vm3 = vweird.f32 %v3040_v40 }
 0x771   : > { %vm2479_vm5 = vmor %vm2477_vm4, %vm2478_vm3 }
 0x772   : > { %v2470_v36 = vsel %vm2469_vm2, %v3038_v7, %v2466_v45  ;;  %v2473_v44 = vmul.f32 %v3040_v40, %v2472_v41 }
 0x773   : > { %v2481_v35 = vmul.f32 %v2470_v36, %v2457_v42 }
 0x774   : > { %v2474_v46 = vmul.f32 0.5, %v2473_v44 }
 0x775   : > { %v2486_v47 = vmul.f32 %v2997_v43, %v2481_v35 }
 0x776   : > { %v2475_v49 = vsub.f32 1.5, %v2474_v46 }
 0x777   : > { %v2491_v20 = vadd.f32 %v2998_v8, %v2486_v47 }
 0x778   : > { %v2476_v51 = vmul.f32 %v3040_v40, %v2475_v49 }
 0x779   : > { %2493 = vst.msk [vmem:[#allocation2] sm:$0xff] %vm804_vm1, %v2491_v20 }
 0x77a   : > { %v2480_v52 = vsel %vm2479_vm5, %v3040_v40, %v2476_v51 }
 0x77b   : > { %v2482_v13 = vmul.f32 %v2480_v52, %v2458_v38 }
 0x77d   : > { %v2487_v54 = vmul.f32 %v2997_v43, %v2482_v13  ;;  %2498 = sbr.rel (%p2805_p3) target bundleno = 1926 (0x786), region = 108 }
 0x77f   : > { %v2492_v30 = vadd.f32 %v2998_v8, %v2487_v54 }
 0x781   : > { %2494 = vst.msk [vmem:[#allocation2 + $0x8] sm:$0xff] %vm804_vm1, %v2492_v30 }
 0x782   : > { %v2499_v55 = vpack.c.bf16 %v2491_v20, %v2491_v20  ;;  %vm2501_vm6 = vcmask 257024   ;;  %v2500_v16 = vpack.c.bf16 %v2492_v30, %v2492_v30 }
 0x784   : > { %2502 = vst.msk [vmem:[#allocation12] sm:$0xf] %vm2501_vm6, %v2499_v55 }
 0x785   : > { %2503 = vst.msk [vmem:[#allocation12 + $0x4] sm:$0xf] %vm2501_vm6, %v2500_v16 }
 0x786 PF: > { %p2868_p4 = scmp.eq.s32.totalorder %s3412_s24, 1  ;;  %s4204_s29 = sld [smem:[#allocation36_spill]] }
 0x787   : > { %s3301_s0 = smov [#allocation12]   ;;  %s3302_s26 = smov 4  }
 0x788   : > { %s2512_s14 = sshll.u32 %s3301_s0, 4  ;;  %s2513_s14 = int_to_ptr.vmem [resolvable:$true] %s2512_s14 }
 0x78c   : > { %s2514_s22 = sshll.u32 %s4204_s29, 4  ;;  %s2515_s22 = int_to_ptr.hbm [resolvable:$true] %s2514_s22 }
 0x78d   : > { %2841 = dma.vmem_to_hbm [thread:$0]  (%p2868_p4), %s2513_s14, 128, %s2515_s22, [#allocation5], %s3296_s18, %s3296_s18, %s3302_s26  }
 0x78e   : > { %3258 = dma.done.wait (%p2868_p4), [#allocation5], 128  }
 0x78f   : > { %3260 = vsyncadd (%p2868_p4), [#allocation5], 4294967168 }
 0x790 PF: > { %s4205_s21 = sld [smem:[#allocation20_spill]] }
 0x791   : > { %s4206_s18 = sld [smem:[#allocation17_spill]] }
 0x792   : > { %s4207_s19 = sld [smem:[#allocation18_spill]] }
 0x793   : > { %s4208_s20 = sld [smem:[#allocation22_spill]] }
 0x794   : > { %s4210_s22 = sld [smem:[#allocation21_spill]] }
 0x796   : > { %s31_s23 = sadd.s32 1, %s4205_s21   ;;  %s4209_s21 = sld [smem:[#allocation19_spill]] }
 0x797   : > { %p28_p5 = scmp.ge.s32.totalorder %s31_s23, 4  }
 0x799   :  { %30 = sbr.rel (!%p28_p5) target bundleno = 22 (0x16), region = 181 }
 0x79e   :  { %2531 = vsyncpa [#allocation4], 1 }
 0x79f   :  { %2533 = vsyncpa [#allocation4 + $0x1], 1 }
 0x7a0   :  { %2534 = vsyncpa [#allocation7], 1 }
 0x7a1   :  { %2535 = vsyncpa [#allocation10], 1 }
 0x7a2   :  { %2537 = vsyncpa [#allocation10 + $0x1], 1 }
 0x7a3   :  { %2538 = vsyncpa [#allocation5], 1 }
 0x7a4   :  { %2540 = vsyncpa [#allocation5 + $0x1], 1 }

</bundles_post_ra>
